<compile_context>
chip_gen: v6e
topology: v6e:2x2x1
jax: 0.10.0
libtpu: 0.0.40
codegen_flags: <defaults>
</compile_context>

<pallas_src>
import functools
import math

import jax
import jax.numpy as jnp
from jax import lax
from jax.experimental import pallas as pl
from jax.experimental.pallas import tpu as pltpu

EPS = 1e-5  # nn.LayerNorm default


def _round_up(x, m):
    return ((x + m - 1) // m) * m


def _vmem_limit(estimate_bytes, lo=16 << 20, hi=48 << 20):
    # Clamp so the request is valid on every generation (v7x physical = 64 MiB).
    return int(min(hi, max(lo, estimate_bytes)))


def _layer_norm_f32(y, gamma, beta):
    # One-pass statistics: var = E[y^2] - E[y]^2 (single fused reduction pass).
    s1 = jnp.mean(y, axis=-1, keepdims=True)
    s2 = jnp.mean(y * y, axis=-1, keepdims=True)
    inv = lax.rsqrt(s2 - s1 * s1 + EPS)
    return (y - s1) * inv * gamma + beta


# ----------------------------------------------------------------------------
# Fully fused kernel: MHCA + AddNorm + FFN + AddNorm (batch-tiled grid)
# ----------------------------------------------------------------------------
def fusion_kernel(q_ref, k_ref, v_ref,
                  wq_ref, bq_ref, wk_ref, bk_ref, wv_ref, bv_ref,
                  wo_ref, bo_ref, g1_ref, be1_ref,
                  w1_ref, b1_ref, w2_ref, b2_ref, g2_ref, be2_ref,
                  o_ref, *, num_heads, head_dim, scale):
    f32 = jnp.float32
    q = q_ref[...].astype(f32)          # (bb, Sq, D)
    k = k_ref[...].astype(f32)          # (bb, Sk, D)
    v = v_ref[...].astype(f32)          # (bb, Sk, D)

    # Fused full-width projections for all heads at once (one MXU matmul each).
    qa = jnp.einsum("bsd,de->bse", q, wq_ref[...].astype(f32),
                    preferred_element_type=f32) + bq_ref[...].astype(f32)
    ka = jnp.einsum("bsd,de->bse", k, wk_ref[...].astype(f32),
                    preferred_element_type=f32) + bk_ref[...].astype(f32)
    va = jnp.einsum("bsd,de->bse", v, wv_ref[...].astype(f32),
                    preferred_element_type=f32) + bv_ref[...].astype(f32)

    acc = jnp.zeros(q.shape, f32)       # (bb, Sq, D)
    for h in range(num_heads):          # static unrolled head loop
        lo = h * head_dim
        hi = lo + head_dim
        qh = qa[:, :, lo:hi]            # (bb, Sq, Dh)
        kh = ka[:, :, lo:hi]            # (bb, Sk, Dh)
        vh = va[:, :, lo:hi]            # (bb, Sk, Dh)

        s = jnp.einsum("bqe,bke->bqk", qh, kh, preferred_element_type=f32) * scale
        m = jnp.max(s, axis=-1, keepdims=True)
        p = jnp.exp(s - m)
        p = p * pl.reciprocal(jnp.sum(p, axis=-1, keepdims=True), approx=True)
        ctx = jnp.einsum("bqk,bke->bqe", p, vh, preferred_element_type=f32)

        # concat(heads) @ Wo  ==  sum_h ctx_h @ Wo[h]  (avoids lane concatenation)
        acc = acc + jnp.einsum("bqe,ed->bqd", ctx, wo_ref[h].astype(f32),
                               preferred_element_type=f32)

    att = acc + bo_ref[...].astype(f32)            # dropout == identity (eval)
    x = _layer_norm_f32(q + att, g1_ref[...].astype(f32), be1_ref[...].astype(f32))

    # FFN (Linear -> ReLU -> Linear) + residual + LayerNorm, no HBM round-trip.
    hid = jnp.einsum("bsd,dh->bsh", x, w1_ref[...].astype(f32),
                     preferred_element_type=f32) + b1_ref[...].astype(f32)
    hid = jnp.maximum(hid, 0.0)
    ffn = jnp.einsum("bsh,hd->bsd", hid, w2_ref[...].astype(f32),
                     preferred_element_type=f32) + b2_ref[...].astype(f32)
    out = _layer_norm_f32(x + ffn, g2_ref[...].astype(f32), be2_ref[...].astype(f32))
    o_ref[...] = out.astype(o_ref.dtype)


def cross_modal_fusion(query, key, value, params, *, vmem_budget=24 << 20):
    B, Sq, D = query.shape
    Sk = key.shape[1]
    H, _, Dh = params["wq"].shape
    Hd = params["w1"].shape[1]
    scale = 1.0 / math.sqrt(Dh)

    # Stack per-head projection weights into full-width matrices so each
    # projection is a single (D, H*Dh) matmul instead of H narrow ones.
    wq = params["wq"].transpose(1, 0, 2).reshape(D, H * Dh)
    wk = params["wk"].transpose(1, 0, 2).reshape(D, H * Dh)
    wv = params["wv"].transpose(1, 0, 2).reshape(D, H * Dh)
    bq = params["bq"].reshape(1, H * Dh)
    bk = params["bk"].reshape(1, H * Dh)
    bv = params["bv"].reshape(1, H * Dh)

    # Batch tile chosen from a VMEM budget (activations + double-buffered I/O).
    per_b = 4 * (2 * 2 * Sq * D          # q tile (double-buffered)
                 + 2 * 2 * 2 * Sk * D    # k, v tiles (double-buffered)
                 + 2 * 2 * Sq * D        # output tile (double-buffered)
                 + 8 * Sq * D            # projected / residual / acc intermediates
                 + 3 * Sk * D
                 + Sq * Sk               # one live per-head score block
                 + Sq * Hd)              # FFN hidden activation
    bb = max(1, min(B, vmem_budget // max(per_b, 1)))
    if B > 1:
        bb = min(bb, _round_up(B, 2) // 2)   # keep >= 2 grid steps for megacore
    B_pad = _round_up(B, bb)
    if B_pad != B:
        pad = ((0, B_pad - B), (0, 0), (0, 0))
        query_p = jnp.pad(query, pad)    # padded elements are discarded below
        key_p = jnp.pad(key, pad)
        value_p = jnp.pad(value, pad)
    else:
        query_p, key_p, value_p = query, key, value
    grid = (B_pad // bb,)

    kern = functools.partial(fusion_kernel, num_heads=H, head_dim=Dh, scale=scale)

    c2 = lambda shape: pl.BlockSpec(shape, lambda i: (0, 0))
    c3 = lambda shape: pl.BlockSpec(shape, lambda i: (0, 0, 0))

    weight_bytes = 4 * (3 * D * H * Dh + 3 * H * Dh + H * Dh * D + D
                        + D * Hd + Hd + Hd * D + D + 4 * D)
    est = weight_bytes + bb * per_b

    flops = int(B_pad * (2 * (Sq + 2 * Sk) * D * D   # Q/K/V projections
                         + 4 * Sq * Sk * D           # scores + ctx (all heads)
                         + 2 * Sq * D * D            # output projection
                         + 4 * Sq * D * Hd           # FFN
                         + 20 * Sq * D))             # norms / residuals
    transcendentals = int(B_pad * (H * Sq * Sk + H * Sq + 2 * Sq))
    bytes_accessed = int(4 * (B_pad * (Sq * D * 2 + 2 * Sk * D)) + weight_bytes)

    out = pl.pallas_call(
        kern,
        out_shape=jax.ShapeDtypeStruct((B_pad, Sq, D), query.dtype),
        grid_spec=pltpu.PrefetchScalarGridSpec(
            num_scalar_prefetch=0,
            grid=grid,
            in_specs=[
                pl.BlockSpec((bb, Sq, D), lambda i: (i, 0, 0)),   # query
                pl.BlockSpec((bb, Sk, D), lambda i: (i, 0, 0)),   # key
                pl.BlockSpec((bb, Sk, D), lambda i: (i, 0, 0)),   # value
                c2((D, H * Dh)),   # Wq (all heads, lane-stacked)
                c2((1, H * Dh)),   # bq
                c2((D, H * Dh)),   # Wk
                c2((1, H * Dh)),   # bk
                c2((D, H * Dh)),   # Wv
                c2((1, H * Dh)),   # bv
                c3((H, Dh, D)),    # Wo (split per head)
                c2((1, D)),        # bo
                c2((1, D)),        # gamma_attn
                c2((1, D)),        # beta_attn
                c2((D, Hd)),       # W1
                c2((1, Hd)),       # b1
                c2((Hd, D)),       # W2
                c2((1, D)),        # b2
                c2((1, D)),        # gamma_ffn
                c2((1, D)),        # beta_ffn
            ],
            out_specs=pl.BlockSpec((bb, Sq, D), lambda i: (i, 0, 0)),
        ),
        compiler_params=pltpu.CompilerParams(
            dimension_semantics=("parallel",),
            vmem_limit_bytes=_vmem_limit(2 * est),
        ),
        cost_estimate=pl.CostEstimate(
            flops=flops,
            transcendentals=transcendentals,
            bytes_accessed=bytes_accessed,
        ),
    )(query_p, key_p, value_p,
      wq, bq, wk, bk, wv, bv,
      params["wo"], params["bo"], params["gamma_attn"], params["beta_attn"],
      params["w1"], params["b1"], params["w2"], params["b2"],
      params["gamma_ffn"], params["beta_ffn"])

    return out[:B] if B_pad != B else out


# ----------------------------------------------------------------------------
# Parameter init + pure-JAX reference (matches the PyTorch module, eval mode)
# ----------------------------------------------------------------------------
def init_params(key, model_dim, hidden_dim, num_heads, dtype=jnp.float32):
    assert model_dim % num_heads == 0
    dh = model_dim // num_heads
    ks = jax.random.split(key, 16)
    s = 0.1
    n = lambda k, shape: jax.random.normal(k, shape, dtype) * s
    return dict(
        wq=n(ks[0], (num_heads, model_dim, dh)), bq=n(ks[1], (num_heads, 1, dh)),
        wk=n(ks[2], (num_heads, model_dim, dh)), bk=n(ks[3], (num_heads, 1, dh)),
        wv=n(ks[4], (num_heads, model_dim, dh)), bv=n(ks[5], (num_heads, 1, dh)),
        wo=n(ks[6], (num_heads, dh, model_dim)), bo=n(ks[7], (1, model_dim)),
        gamma_attn=1.0 + n(ks[8], (1, model_dim)), beta_attn=n(ks[9], (1, model_dim)),
        w1=n(ks[10], (model_dim, hidden_dim)), b1=n(ks[11], (1, hidden_dim)),
        w2=n(ks[12], (hidden_dim, model_dim)), b2=n(ks[13], (1, model_dim)),
        gamma_ffn=1.0 + n(ks[14], (1, model_dim)), beta_ffn=n(ks[15], (1, model_dim)),
    )


def reference_forward(query, key, value, p):
    H, _, Dh = p["wq"].shape
    D = query.shape[-1]

    def layer_norm(y, g, b):
        m = jnp.mean(y, axis=-1, keepdims=True)
        v = jnp.mean((y - m) ** 2, axis=-1, keepdims=True)
        return (y - m) * lax.rsqrt(v + EPS) * g + b

    heads = []
    for h in range(H):
        Q = jnp.einsum("bsd,de->bse", query, p["wq"][h]) + p["bq"][h, 0]
        K = jnp.einsum("bsd,de->bse", key, p["wk"][h]) + p["bk"][h, 0]
        V = jnp.einsum("bsd,de->bse", value, p["wv"][h]) + p["bv"][h, 0]
        s = jnp.einsum("bqe,bke->bqk", Q, K) / math.sqrt(Dh)
        a = jax.nn.softmax(s, axis=-1)
        heads.append(jnp.einsum("bqk,bke->bqe", a, V))
    ctx = jnp.concatenate(heads, axis=-1)
    att = jnp.einsum("bsf,fd->bsd", ctx, p["wo"].reshape(H * Dh, D)) + p["bo"][0]
    x = layer_norm(query + att, p["gamma_attn"][0], p["beta_attn"][0])
    hid = jax.nn.relu(jnp.einsum("bsd,dh->bsh", x, p["w1"]) + p["b1"][0])
    f = jnp.einsum("bsh,hd->bsd", hid, p["w2"]) + p["b2"][0]
    return layer_norm(x + f, p["gamma_ffn"][0], p["beta_ffn"][0])


if __name__ == "__main__":
    # Small shapes consistent with the module: batch=2, seq=8, model_dim=32,
    # hidden_dim=64, num_heads=4 (head_dim=8).
    B, S, D, HID, NH = 2, 8, 32, 64, 4

    root = jax.random.PRNGKey(0)
    kq, kk, kv, kp = jax.random.split(root, 4)
    query = jax.random.normal(kq, (B, S, D), jnp.float32)
    key_in = jax.random.normal(kk, (B, S, D), jnp.float32)
    value = jax.random.normal(kv, (B, S, D), jnp.float32)
    params = init_params(kp, D, HID, NH)

    out = cross_modal_fusion(query, key_in, value, params)
    out = jax.block_until_ready(out)

    ref = reference_forward(query, key_in, value, params)
    max_err = float(jnp.max(jnp.abs(out - ref)))
    assert out.shape == (B, S, D)
    assert jnp.allclose(out, ref, atol=2e-2, rtol=2e-2), f"mismatch vs reference: {max_err}"

    print("KERNEL_OK")
</pallas_src>

<mosaic_0001>
module attributes {stable_mosaic.version = 11 : i64} {
  func.func @fusion_kernel(%arg0: i32, %arg1: memref<1x8x32xf32, #tpu.memory_space<vmem>>, %arg2: memref<1x8x32xf32, #tpu.memory_space<vmem>>, %arg3: memref<1x8x32xf32, #tpu.memory_space<vmem>>, %arg4: memref<32x32xf32, #tpu.memory_space<vmem>>, %arg5: memref<1x32xf32, #tpu.memory_space<vmem>>, %arg6: memref<32x32xf32, #tpu.memory_space<vmem>>, %arg7: memref<1x32xf32, #tpu.memory_space<vmem>>, %arg8: memref<32x32xf32, #tpu.memory_space<vmem>>, %arg9: memref<1x32xf32, #tpu.memory_space<vmem>>, %arg10: memref<4x8x32xf32, #tpu.memory_space<vmem>>, %arg11: memref<1x32xf32, #tpu.memory_space<vmem>>, %arg12: memref<1x32xf32, #tpu.memory_space<vmem>>, %arg13: memref<1x32xf32, #tpu.memory_space<vmem>>, %arg14: memref<32x64xf32, #tpu.memory_space<vmem>>, %arg15: memref<1x64xf32, #tpu.memory_space<vmem>>, %arg16: memref<64x32xf32, #tpu.memory_space<vmem>>, %arg17: memref<1x32xf32, #tpu.memory_space<vmem>>, %arg18: memref<1x32xf32, #tpu.memory_space<vmem>>, %arg19: memref<1x32xf32, #tpu.memory_space<vmem>>, %arg20: memref<1x8x32xf32, #tpu.memory_space<vmem>>) attributes {dimension_semantics = [#tpu.dimension_semantics<parallel>], iteration_bounds = array<i64: 2>, scalar_prefetch = 0 : i64, scratch_operands = 0 : i64, tpu.core_type = #tpu.core_type<tc>, window_params = [{transform_indices = @transform_0, window_bounds = array<i64: 1, 8, 32>}, {transform_indices = @transform_1, window_bounds = array<i64: 1, 8, 32>}, {transform_indices = @transform_2, window_bounds = array<i64: 1, 8, 32>}, {pipeline_mode = #tpu.pipeline_mode<synchronous>, transform_indices = @transform_3, window_bounds = array<i64: 32, 32>}, {pipeline_mode = #tpu.pipeline_mode<synchronous>, transform_indices = @transform_4, window_bounds = array<i64: 1, 32>}, {pipeline_mode = #tpu.pipeline_mode<synchronous>, transform_indices = @transform_5, window_bounds = array<i64: 32, 32>}, {pipeline_mode = #tpu.pipeline_mode<synchronous>, transform_indices = @transform_6, window_bounds = array<i64: 1, 32>}, {pipeline_mode = #tpu.pipeline_mode<synchronous>, transform_indices = @transform_7, window_bounds = array<i64: 32, 32>}, {pipeline_mode = #tpu.pipeline_mode<synchronous>, transform_indices = @transform_8, window_bounds = array<i64: 1, 32>}, {pipeline_mode = #tpu.pipeline_mode<synchronous>, transform_indices = @transform_9, window_bounds = array<i64: 4, 8, 32>}, {pipeline_mode = #tpu.pipeline_mode<synchronous>, transform_indices = @transform_10, window_bounds = array<i64: 1, 32>}, {pipeline_mode = #tpu.pipeline_mode<synchronous>, transform_indices = @transform_11, window_bounds = array<i64: 1, 32>}, {pipeline_mode = #tpu.pipeline_mode<synchronous>, transform_indices = @transform_12, window_bounds = array<i64: 1, 32>}, {pipeline_mode = #tpu.pipeline_mode<synchronous>, transform_indices = @transform_13, window_bounds = array<i64: 32, 64>}, {pipeline_mode = #tpu.pipeline_mode<synchronous>, transform_indices = @transform_14, window_bounds = array<i64: 1, 64>}, {pipeline_mode = #tpu.pipeline_mode<synchronous>, transform_indices = @transform_15, window_bounds = array<i64: 64, 32>}, {pipeline_mode = #tpu.pipeline_mode<synchronous>, transform_indices = @transform_16, window_bounds = array<i64: 1, 32>}, {pipeline_mode = #tpu.pipeline_mode<synchronous>, transform_indices = @transform_17, window_bounds = array<i64: 1, 32>}, {pipeline_mode = #tpu.pipeline_mode<synchronous>, transform_indices = @transform_18, window_bounds = array<i64: 1, 32>}, {transform_indices = @transform_19, window_bounds = array<i64: 1, 8, 32>}]} {
    %c0 = arith.constant 0 : index
    %c0_0 = arith.constant 0 : index
    %c0_1 = arith.constant 0 : index
    %0 = vector.load %arg1[%c0, %c0_0, %c0_1] : memref<1x8x32xf32, #tpu.memory_space<vmem>>, vector<1x8x32xf32>
    %c0_2 = arith.constant 0 : index
    %c0_3 = arith.constant 0 : index
    %c0_4 = arith.constant 0 : index
    %1 = vector.load %arg2[%c0_2, %c0_3, %c0_4] : memref<1x8x32xf32, #tpu.memory_space<vmem>>, vector<1x8x32xf32>
    %c0_5 = arith.constant 0 : index
    %c0_6 = arith.constant 0 : index
    %c0_7 = arith.constant 0 : index
    %2 = vector.load %arg3[%c0_5, %c0_6, %c0_7] : memref<1x8x32xf32, #tpu.memory_space<vmem>>, vector<1x8x32xf32>
    %c0_8 = arith.constant 0 : index
    %c0_9 = arith.constant 0 : index
    %3 = vector.load %arg4[%c0_8, %c0_9] : memref<32x32xf32, #tpu.memory_space<vmem>>, vector<32x32xf32>
    "tpu.trace_start"() <{level = 10 : i32, message = "bsd,de->bse"}> : () -> ()
    %cst = arith.constant dense<0.000000e+00> : vector<1x8x32xf32>
    %4 = tpu.matmul %0, %3, %cst {dimension_numbers = #tpu.dot_dimension_numbers<[2], [0], [0, 1], [1], [0, 0, 0, 1, 1, 1], [], []>} : vector<1x8x32xf32>, vector<32x32xf32>, vector<1x8x32xf32> -> vector<1x8x32xf32>
    "tpu.trace_stop"() : () -> ()
    %c0_10 = arith.constant 0 : index
    %c0_11 = arith.constant 0 : index
    %5 = vector.load %arg5[%c0_10, %c0_11] : memref<1x32xf32, #tpu.memory_space<vmem>>, vector<1x32xf32>
    %6 = vector.shape_cast %5 : vector<1x32xf32> to vector<1x1x32xf32>
    %7 = vector.broadcast %6 : vector<1x1x32xf32> to vector<1x8x32xf32>
    %8 = arith.addf %4, %7 : vector<1x8x32xf32>
    %c0_12 = arith.constant 0 : index
    %c0_13 = arith.constant 0 : index
    %9 = vector.load %arg6[%c0_12, %c0_13] : memref<32x32xf32, #tpu.memory_space<vmem>>, vector<32x32xf32>
    "tpu.trace_start"() <{level = 10 : i32, message = "bsd,de->bse"}> : () -> ()
    %cst_14 = arith.constant dense<0.000000e+00> : vector<1x8x32xf32>
    %10 = tpu.matmul %1, %9, %cst_14 {dimension_numbers = #tpu.dot_dimension_numbers<[2], [0], [0, 1], [1], [0, 0, 0, 1, 1, 1], [], []>} : vector<1x8x32xf32>, vector<32x32xf32>, vector<1x8x32xf32> -> vector<1x8x32xf32>
    "tpu.trace_stop"() : () -> ()
    %c0_15 = arith.constant 0 : index
    %c0_16 = arith.constant 0 : index
    %11 = vector.load %arg7[%c0_15, %c0_16] : memref<1x32xf32, #tpu.memory_space<vmem>>, vector<1x32xf32>
    %12 = vector.shape_cast %11 : vector<1x32xf32> to vector<1x1x32xf32>
    %13 = vector.broadcast %12 : vector<1x1x32xf32> to vector<1x8x32xf32>
    %14 = arith.addf %10, %13 : vector<1x8x32xf32>
    %c0_17 = arith.constant 0 : index
    %c0_18 = arith.constant 0 : index
    %15 = vector.load %arg8[%c0_17, %c0_18] : memref<32x32xf32, #tpu.memory_space<vmem>>, vector<32x32xf32>
    "tpu.trace_start"() <{level = 10 : i32, message = "bsd,de->bse"}> : () -> ()
    %cst_19 = arith.constant dense<0.000000e+00> : vector<1x8x32xf32>
    %16 = tpu.matmul %2, %15, %cst_19 {dimension_numbers = #tpu.dot_dimension_numbers<[2], [0], [0, 1], [1], [0, 0, 0, 1, 1, 1], [], []>} : vector<1x8x32xf32>, vector<32x32xf32>, vector<1x8x32xf32> -> vector<1x8x32xf32>
    "tpu.trace_stop"() : () -> ()
    %c0_20 = arith.constant 0 : index
    %c0_21 = arith.constant 0 : index
    %17 = vector.load %arg9[%c0_20, %c0_21] : memref<1x32xf32, #tpu.memory_space<vmem>>, vector<1x32xf32>
    %18 = vector.shape_cast %17 : vector<1x32xf32> to vector<1x1x32xf32>
    %19 = vector.broadcast %18 : vector<1x1x32xf32> to vector<1x8x32xf32>
    %20 = arith.addf %16, %19 : vector<1x8x32xf32>
    %cst_22 = arith.constant 0.000000e+00 : f32
    %21 = vector.broadcast %cst_22 : f32 to vector<1x8x32xf32>
    %22 = vector.extract_strided_slice %8 {offsets = [0, 0, 0], sizes = [1, 8, 8], strides = [1, 1, 1]} : vector<1x8x32xf32> to vector<1x8x8xf32>
    %23 = vector.extract_strided_slice %14 {offsets = [0, 0, 0], sizes = [1, 8, 8], strides = [1, 1, 1]} : vector<1x8x32xf32> to vector<1x8x8xf32>
    %24 = vector.extract_strided_slice %20 {offsets = [0, 0, 0], sizes = [1, 8, 8], strides = [1, 1, 1]} : vector<1x8x32xf32> to vector<1x8x8xf32>
    "tpu.trace_start"() <{level = 10 : i32, message = "bqe,bke->bqk"}> : () -> ()
    %cst_23 = arith.constant dense<0.000000e+00> : vector<1x8x8xf32>
    %25 = tpu.matmul %22, %23, %cst_23 {dimension_numbers = #tpu.dot_dimension_numbers<[2], [2], [1], [1], [0, 0, 0, 1, 1, 1], [0], [0]>} : vector<1x8x8xf32>, vector<1x8x8xf32>, vector<1x8x8xf32> -> vector<1x8x8xf32>
    "tpu.trace_stop"() : () -> ()
    %cst_24 = arith.constant 0.353553385 : f32
    %26 = vector.broadcast %cst_24 : f32 to vector<1x8x8xf32>
    %27 = arith.mulf %25, %26 : vector<1x8x8xf32>
    %cst_25 = arith.constant dense<0xFF800000> : vector<1x8xf32>
    %28 = vector.multi_reduction <maximumf>, %27, %cst_25 [2] : vector<1x8x8xf32> to vector<1x8xf32>
    %29 = vector.shape_cast %28 : vector<1x8xf32> to vector<1x8x1xf32>
    %30 = vector.broadcast %29 : vector<1x8x1xf32> to vector<1x8x8xf32>
    %31 = arith.subf %27, %30 : vector<1x8x8xf32>
    %32 = math.exp %31 : vector<1x8x8xf32>
    %cst_26 = arith.constant dense<0.000000e+00> : vector<1x8xf32>
    %33 = vector.multi_reduction <add>, %32, %cst_26 [2] : vector<1x8x8xf32> to vector<1x8xf32>
    %34 = vector.shape_cast %33 : vector<1x8xf32> to vector<1x8x1xf32>
    %35 = tpu.reciprocal %34 {approx = true} : vector<1x8x1xf32> -> vector<1x8x1xf32>
    %36 = vector.broadcast %35 : vector<1x8x1xf32> to vector<1x8x8xf32>
    %37 = arith.mulf %32, %36 : vector<1x8x8xf32>
    "tpu.trace_start"() <{level = 10 : i32, message = "bqk,bke->bqe"}> : () -> ()
    %cst_27 = arith.constant dense<0.000000e+00> : vector<1x8x8xf32>
    %38 = tpu.matmul %37, %24, %cst_27 {dimension_numbers = #tpu.dot_dimension_numbers<[2], [1], [1], [2], [0, 0, 0, 1, 1, 2], [0], [0]>} : vector<1x8x8xf32>, vector<1x8x8xf32>, vector<1x8x8xf32> -> vector<1x8x8xf32>
    "tpu.trace_stop"() : () -> ()
    %c0_28 = arith.constant 0 : index
    %c0_29 = arith.constant 0 : index
    %c0_30 = arith.constant 0 : index
    %39 = vector.load %arg10[%c0_28, %c0_29, %c0_30] : memref<4x8x32xf32, #tpu.memory_space<vmem>>, vector<1x8x32xf32>
    %40 = vector.shape_cast %39 : vector<1x8x32xf32> to vector<8x32xf32>
    "tpu.trace_start"() <{level = 10 : i32, message = "bqe,ed->bqd"}> : () -> ()
    %cst_31 = arith.constant dense<0.000000e+00> : vector<1x8x32xf32>
    %41 = tpu.matmul %38, %40, %cst_31 {dimension_numbers = #tpu.dot_dimension_numbers<[2], [0], [0, 1], [1], [0, 0, 0, 1, 1, 1], [], []>} : vector<1x8x8xf32>, vector<8x32xf32>, vector<1x8x32xf32> -> vector<1x8x32xf32>
    "tpu.trace_stop"() : () -> ()
    %42 = arith.addf %21, %41 : vector<1x8x32xf32>
    %43 = vector.extract_strided_slice %8 {offsets = [0, 0, 8], sizes = [1, 8, 8], strides = [1, 1, 1]} : vector<1x8x32xf32> to vector<1x8x8xf32>
    %44 = vector.extract_strided_slice %14 {offsets = [0, 0, 8], sizes = [1, 8, 8], strides = [1, 1, 1]} : vector<1x8x32xf32> to vector<1x8x8xf32>
    %45 = vector.extract_strided_slice %20 {offsets = [0, 0, 8], sizes = [1, 8, 8], strides = [1, 1, 1]} : vector<1x8x32xf32> to vector<1x8x8xf32>
    "tpu.trace_start"() <{level = 10 : i32, message = "bqe,bke->bqk"}> : () -> ()
    %cst_32 = arith.constant dense<0.000000e+00> : vector<1x8x8xf32>
    %46 = tpu.matmul %43, %44, %cst_32 {dimension_numbers = #tpu.dot_dimension_numbers<[2], [2], [1], [1], [0, 0, 0, 1, 1, 1], [0], [0]>} : vector<1x8x8xf32>, vector<1x8x8xf32>, vector<1x8x8xf32> -> vector<1x8x8xf32>
    "tpu.trace_stop"() : () -> ()
    %cst_33 = arith.constant 0.353553385 : f32
    %47 = vector.broadcast %cst_33 : f32 to vector<1x8x8xf32>
    %48 = arith.mulf %46, %47 : vector<1x8x8xf32>
    %cst_34 = arith.constant dense<0xFF800000> : vector<1x8xf32>
    %49 = vector.multi_reduction <maximumf>, %48, %cst_34 [2] : vector<1x8x8xf32> to vector<1x8xf32>
    %50 = vector.shape_cast %49 : vector<1x8xf32> to vector<1x8x1xf32>
    %51 = vector.broadcast %50 : vector<1x8x1xf32> to vector<1x8x8xf32>
    %52 = arith.subf %48, %51 : vector<1x8x8xf32>
    %53 = math.exp %52 : vector<1x8x8xf32>
    %cst_35 = arith.constant dense<0.000000e+00> : vector<1x8xf32>
    %54 = vector.multi_reduction <add>, %53, %cst_35 [2] : vector<1x8x8xf32> to vector<1x8xf32>
    %55 = vector.shape_cast %54 : vector<1x8xf32> to vector<1x8x1xf32>
    %56 = tpu.reciprocal %55 {approx = true} : vector<1x8x1xf32> -> vector<1x8x1xf32>
    %57 = vector.broadcast %56 : vector<1x8x1xf32> to vector<1x8x8xf32>
    %58 = arith.mulf %53, %57 : vector<1x8x8xf32>
    "tpu.trace_start"() <{level = 10 : i32, message = "bqk,bke->bqe"}> : () -> ()
    %cst_36 = arith.constant dense<0.000000e+00> : vector<1x8x8xf32>
    %59 = tpu.matmul %58, %45, %cst_36 {dimension_numbers = #tpu.dot_dimension_numbers<[2], [1], [1], [2], [0, 0, 0, 1, 1, 2], [0], [0]>} : vector<1x8x8xf32>, vector<1x8x8xf32>, vector<1x8x8xf32> -> vector<1x8x8xf32>
    "tpu.trace_stop"() : () -> ()
    %c1 = arith.constant 1 : index
    %c0_37 = arith.constant 0 : index
    %c0_38 = arith.constant 0 : index
    %60 = vector.load %arg10[%c1, %c0_37, %c0_38] : memref<4x8x32xf32, #tpu.memory_space<vmem>>, vector<1x8x32xf32>
    %61 = vector.shape_cast %60 : vector<1x8x32xf32> to vector<8x32xf32>
    "tpu.trace_start"() <{level = 10 : i32, message = "bqe,ed->bqd"}> : () -> ()
    %cst_39 = arith.constant dense<0.000000e+00> : vector<1x8x32xf32>
    %62 = tpu.matmul %59, %61, %cst_39 {dimension_numbers = #tpu.dot_dimension_numbers<[2], [0], [0, 1], [1], [0, 0, 0, 1, 1, 1], [], []>} : vector<1x8x8xf32>, vector<8x32xf32>, vector<1x8x32xf32> -> vector<1x8x32xf32>
    "tpu.trace_stop"() : () -> ()
    %63 = arith.addf %42, %62 : vector<1x8x32xf32>
    %64 = vector.extract_strided_slice %8 {offsets = [0, 0, 16], sizes = [1, 8, 8], strides = [1, 1, 1]} : vector<1x8x32xf32> to vector<1x8x8xf32>
    %65 = vector.extract_strided_slice %14 {offsets = [0, 0, 16], sizes = [1, 8, 8], strides = [1, 1, 1]} : vector<1x8x32xf32> to vector<1x8x8xf32>
    %66 = vector.extract_strided_slice %20 {offsets = [0, 0, 16], sizes = [1, 8, 8], strides = [1, 1, 1]} : vector<1x8x32xf32> to vector<1x8x8xf32>
    "tpu.trace_start"() <{level = 10 : i32, message = "bqe,bke->bqk"}> : () -> ()
    %cst_40 = arith.constant dense<0.000000e+00> : vector<1x8x8xf32>
    %67 = tpu.matmul %64, %65, %cst_40 {dimension_numbers = #tpu.dot_dimension_numbers<[2], [2], [1], [1], [0, 0, 0, 1, 1, 1], [0], [0]>} : vector<1x8x8xf32>, vector<1x8x8xf32>, vector<1x8x8xf32> -> vector<1x8x8xf32>
    "tpu.trace_stop"() : () -> ()
    %cst_41 = arith.constant 0.353553385 : f32
    %68 = vector.broadcast %cst_41 : f32 to vector<1x8x8xf32>
    %69 = arith.mulf %67, %68 : vector<1x8x8xf32>
    %cst_42 = arith.constant dense<0xFF800000> : vector<1x8xf32>
    %70 = vector.multi_reduction <maximumf>, %69, %cst_42 [2] : vector<1x8x8xf32> to vector<1x8xf32>
    %71 = vector.shape_cast %70 : vector<1x8xf32> to vector<1x8x1xf32>
    %72 = vector.broadcast %71 : vector<1x8x1xf32> to vector<1x8x8xf32>
    %73 = arith.subf %69, %72 : vector<1x8x8xf32>
    %74 = math.exp %73 : vector<1x8x8xf32>
    %cst_43 = arith.constant dense<0.000000e+00> : vector<1x8xf32>
    %75 = vector.multi_reduction <add>, %74, %cst_43 [2] : vector<1x8x8xf32> to vector<1x8xf32>
    %76 = vector.shape_cast %75 : vector<1x8xf32> to vector<1x8x1xf32>
    %77 = tpu.reciprocal %76 {approx = true} : vector<1x8x1xf32> -> vector<1x8x1xf32>
    %78 = vector.broadcast %77 : vector<1x8x1xf32> to vector<1x8x8xf32>
    %79 = arith.mulf %74, %78 : vector<1x8x8xf32>
    "tpu.trace_start"() <{level = 10 : i32, message = "bqk,bke->bqe"}> : () -> ()
    %cst_44 = arith.constant dense<0.000000e+00> : vector<1x8x8xf32>
    %80 = tpu.matmul %79, %66, %cst_44 {dimension_numbers = #tpu.dot_dimension_numbers<[2], [1], [1], [2], [0, 0, 0, 1, 1, 2], [0], [0]>} : vector<1x8x8xf32>, vector<1x8x8xf32>, vector<1x8x8xf32> -> vector<1x8x8xf32>
    "tpu.trace_stop"() : () -> ()
    %c2 = arith.constant 2 : index
    %c0_45 = arith.constant 0 : index
    %c0_46 = arith.constant 0 : index
    %81 = vector.load %arg10[%c2, %c0_45, %c0_46] : memref<4x8x32xf32, #tpu.memory_space<vmem>>, vector<1x8x32xf32>
    %82 = vector.shape_cast %81 : vector<1x8x32xf32> to vector<8x32xf32>
    "tpu.trace_start"() <{level = 10 : i32, message = "bqe,ed->bqd"}> : () -> ()
    %cst_47 = arith.constant dense<0.000000e+00> : vector<1x8x32xf32>
    %83 = tpu.matmul %80, %82, %cst_47 {dimension_numbers = #tpu.dot_dimension_numbers<[2], [0], [0, 1], [1], [0, 0, 0, 1, 1, 1], [], []>} : vector<1x8x8xf32>, vector<8x32xf32>, vector<1x8x32xf32> -> vector<1x8x32xf32>
    "tpu.trace_stop"() : () -> ()
    %84 = arith.addf %63, %83 : vector<1x8x32xf32>
    %85 = vector.extract_strided_slice %8 {offsets = [0, 0, 24], sizes = [1, 8, 8], strides = [1, 1, 1]} : vector<1x8x32xf32> to vector<1x8x8xf32>
    %86 = vector.extract_strided_slice %14 {offsets = [0, 0, 24], sizes = [1, 8, 8], strides = [1, 1, 1]} : vector<1x8x32xf32> to vector<1x8x8xf32>
    %87 = vector.extract_strided_slice %20 {offsets = [0, 0, 24], sizes = [1, 8, 8], strides = [1, 1, 1]} : vector<1x8x32xf32> to vector<1x8x8xf32>
    "tpu.trace_start"() <{level = 10 : i32, message = "bqe,bke->bqk"}> : () -> ()
    %cst_48 = arith.constant dense<0.000000e+00> : vector<1x8x8xf32>
    %88 = tpu.matmul %85, %86, %cst_48 {dimension_numbers = #tpu.dot_dimension_numbers<[2], [2], [1], [1], [0, 0, 0, 1, 1, 1], [0], [0]>} : vector<1x8x8xf32>, vector<1x8x8xf32>, vector<1x8x8xf32> -> vector<1x8x8xf32>
    "tpu.trace_stop"() : () -> ()
    %cst_49 = arith.constant 0.353553385 : f32
    %89 = vector.broadcast %cst_49 : f32 to vector<1x8x8xf32>
    %90 = arith.mulf %88, %89 : vector<1x8x8xf32>
    %cst_50 = arith.constant dense<0xFF800000> : vector<1x8xf32>
    %91 = vector.multi_reduction <maximumf>, %90, %cst_50 [2] : vector<1x8x8xf32> to vector<1x8xf32>
    %92 = vector.shape_cast %91 : vector<1x8xf32> to vector<1x8x1xf32>
    %93 = vector.broadcast %92 : vector<1x8x1xf32> to vector<1x8x8xf32>
    %94 = arith.subf %90, %93 : vector<1x8x8xf32>
    %95 = math.exp %94 : vector<1x8x8xf32>
    %cst_51 = arith.constant dense<0.000000e+00> : vector<1x8xf32>
    %96 = vector.multi_reduction <add>, %95, %cst_51 [2] : vector<1x8x8xf32> to vector<1x8xf32>
    %97 = vector.shape_cast %96 : vector<1x8xf32> to vector<1x8x1xf32>
    %98 = tpu.reciprocal %97 {approx = true} : vector<1x8x1xf32> -> vector<1x8x1xf32>
    %99 = vector.broadcast %98 : vector<1x8x1xf32> to vector<1x8x8xf32>
    %100 = arith.mulf %95, %99 : vector<1x8x8xf32>
    "tpu.trace_start"() <{level = 10 : i32, message = "bqk,bke->bqe"}> : () -> ()
    %cst_52 = arith.constant dense<0.000000e+00> : vector<1x8x8xf32>
    %101 = tpu.matmul %100, %87, %cst_52 {dimension_numbers = #tpu.dot_dimension_numbers<[2], [1], [1], [2], [0, 0, 0, 1, 1, 2], [0], [0]>} : vector<1x8x8xf32>, vector<1x8x8xf32>, vector<1x8x8xf32> -> vector<1x8x8xf32>
    "tpu.trace_stop"() : () -> ()
    %c3 = arith.constant 3 : index
    %c0_53 = arith.constant 0 : index
    %c0_54 = arith.constant 0 : index
    %102 = vector.load %arg10[%c3, %c0_53, %c0_54] : memref<4x8x32xf32, #tpu.memory_space<vmem>>, vector<1x8x32xf32>
    %103 = vector.shape_cast %102 : vector<1x8x32xf32> to vector<8x32xf32>
    "tpu.trace_start"() <{level = 10 : i32, message = "bqe,ed->bqd"}> : () -> ()
    %cst_55 = arith.constant dense<0.000000e+00> : vector<1x8x32xf32>
    %104 = tpu.matmul %101, %103, %cst_55 {dimension_numbers = #tpu.dot_dimension_numbers<[2], [0], [0, 1], [1], [0, 0, 0, 1, 1, 1], [], []>} : vector<1x8x8xf32>, vector<8x32xf32>, vector<1x8x32xf32> -> vector<1x8x32xf32>
    "tpu.trace_stop"() : () -> ()
    %105 = arith.addf %84, %104 : vector<1x8x32xf32>
    %c0_56 = arith.constant 0 : index
    %c0_57 = arith.constant 0 : index
    %106 = vector.load %arg11[%c0_56, %c0_57] : memref<1x32xf32, #tpu.memory_space<vmem>>, vector<1x32xf32>
    %107 = vector.shape_cast %106 : vector<1x32xf32> to vector<1x1x32xf32>
    %108 = vector.broadcast %107 : vector<1x1x32xf32> to vector<1x8x32xf32>
    %109 = arith.addf %105, %108 : vector<1x8x32xf32>
    %110 = arith.addf %0, %109 : vector<1x8x32xf32>
    %c0_58 = arith.constant 0 : index
    %c0_59 = arith.constant 0 : index
    %111 = vector.load %arg12[%c0_58, %c0_59] : memref<1x32xf32, #tpu.memory_space<vmem>>, vector<1x32xf32>
    %c0_60 = arith.constant 0 : index
    %c0_61 = arith.constant 0 : index
    %112 = vector.load %arg13[%c0_60, %c0_61] : memref<1x32xf32, #tpu.memory_space<vmem>>, vector<1x32xf32>
    %cst_62 = arith.constant dense<0.000000e+00> : vector<1x8xf32>
    %113 = vector.multi_reduction <add>, %110, %cst_62 [2] : vector<1x8x32xf32> to vector<1x8xf32>
    %114 = vector.shape_cast %113 : vector<1x8xf32> to vector<1x8x1xf32>
    %cst_63 = arith.constant 3.200000e+01 : f32
    %115 = vector.broadcast %cst_63 : f32 to vector<1x8x1xf32>
    %116 = arith.divf %114, %115 : vector<1x8x1xf32>
    %117 = arith.mulf %110, %110 : vector<1x8x32xf32>
    %cst_64 = arith.constant dense<0.000000e+00> : vector<1x8xf32>
    %118 = vector.multi_reduction <add>, %117, %cst_64 [2] : vector<1x8x32xf32> to vector<1x8xf32>
    %119 = vector.shape_cast %118 : vector<1x8xf32> to vector<1x8x1xf32>
    %cst_65 = arith.constant 3.200000e+01 : f32
    %120 = vector.broadcast %cst_65 : f32 to vector<1x8x1xf32>
    %121 = arith.divf %119, %120 : vector<1x8x1xf32>
    %122 = arith.mulf %116, %116 : vector<1x8x1xf32>
    %123 = arith.subf %121, %122 : vector<1x8x1xf32>
    %cst_66 = arith.constant 9.99999974E-6 : f32
    %124 = vector.broadcast %cst_66 : f32 to vector<1x8x1xf32>
    %125 = arith.addf %123, %124 : vector<1x8x1xf32>
    %126 = math.rsqrt %125 : vector<1x8x1xf32>
    %127 = vector.broadcast %116 : vector<1x8x1xf32> to vector<1x8x32xf32>
    %128 = arith.subf %110, %127 : vector<1x8x32xf32>
    %129 = vector.broadcast %126 : vector<1x8x1xf32> to vector<1x8x32xf32>
    %130 = arith.mulf %128, %129 : vector<1x8x32xf32>
    %131 = vector.shape_cast %111 : vector<1x32xf32> to vector<1x1x32xf32>
    %132 = vector.broadcast %131 : vector<1x1x32xf32> to vector<1x8x32xf32>
    %133 = arith.mulf %130, %132 : vector<1x8x32xf32>
    %134 = vector.shape_cast %112 : vector<1x32xf32> to vector<1x1x32xf32>
    %135 = vector.broadcast %134 : vector<1x1x32xf32> to vector<1x8x32xf32>
    %136 = arith.addf %133, %135 : vector<1x8x32xf32>
    %c0_67 = arith.constant 0 : index
    %c0_68 = arith.constant 0 : index
    %137 = vector.load %arg14[%c0_67, %c0_68] : memref<32x64xf32, #tpu.memory_space<vmem>>, vector<32x64xf32>
    "tpu.trace_start"() <{level = 10 : i32, message = "bsd,dh->bsh"}> : () -> ()
    %cst_69 = arith.constant dense<0.000000e+00> : vector<1x8x64xf32>
    %138 = tpu.matmul %136, %137, %cst_69 {dimension_numbers = #tpu.dot_dimension_numbers<[2], [0], [0, 1], [1], [0, 0, 0, 1, 1, 1], [], []>} : vector<1x8x32xf32>, vector<32x64xf32>, vector<1x8x64xf32> -> vector<1x8x64xf32>
    "tpu.trace_stop"() : () -> ()
    %c0_70 = arith.constant 0 : index
    %c0_71 = arith.constant 0 : index
    %139 = vector.load %arg15[%c0_70, %c0_71] : memref<1x64xf32, #tpu.memory_space<vmem>>, vector<1x64xf32>
    %140 = vector.shape_cast %139 : vector<1x64xf32> to vector<1x1x64xf32>
    %141 = vector.broadcast %140 : vector<1x1x64xf32> to vector<1x8x64xf32>
    %142 = arith.addf %138, %141 : vector<1x8x64xf32>
    %cst_72 = arith.constant 0.000000e+00 : f32
    %143 = vector.broadcast %cst_72 : f32 to vector<1x8x64xf32>
    %144 = arith.maximumf %142, %143 : vector<1x8x64xf32>
    %c0_73 = arith.constant 0 : index
    %c0_74 = arith.constant 0 : index
    %145 = vector.load %arg16[%c0_73, %c0_74] : memref<64x32xf32, #tpu.memory_space<vmem>>, vector<64x32xf32>
    "tpu.trace_start"() <{level = 10 : i32, message = "bsh,hd->bsd"}> : () -> ()
    %cst_75 = arith.constant dense<0.000000e+00> : vector<1x8x32xf32>
    %146 = tpu.matmul %144, %145, %cst_75 {dimension_numbers = #tpu.dot_dimension_numbers<[2], [0], [0, 1], [1], [0, 0, 0, 1, 1, 1], [], []>} : vector<1x8x64xf32>, vector<64x32xf32>, vector<1x8x32xf32> -> vector<1x8x32xf32>
    "tpu.trace_stop"() : () -> ()
    %c0_76 = arith.constant 0 : index
    %c0_77 = arith.constant 0 : index
    %147 = vector.load %arg17[%c0_76, %c0_77] : memref<1x32xf32, #tpu.memory_space<vmem>>, vector<1x32xf32>
    %148 = vector.shape_cast %147 : vector<1x32xf32> to vector<1x1x32xf32>
    %149 = vector.broadcast %148 : vector<1x1x32xf32> to vector<1x8x32xf32>
    %150 = arith.addf %146, %149 : vector<1x8x32xf32>
    %151 = arith.addf %136, %150 : vector<1x8x32xf32>
    %c0_78 = arith.constant 0 : index
    %c0_79 = arith.constant 0 : index
    %152 = vector.load %arg18[%c0_78, %c0_79] : memref<1x32xf32, #tpu.memory_space<vmem>>, vector<1x32xf32>
    %c0_80 = arith.constant 0 : index
    %c0_81 = arith.constant 0 : index
    %153 = vector.load %arg19[%c0_80, %c0_81] : memref<1x32xf32, #tpu.memory_space<vmem>>, vector<1x32xf32>
    %cst_82 = arith.constant dense<0.000000e+00> : vector<1x8xf32>
    %154 = vector.multi_reduction <add>, %151, %cst_82 [2] : vector<1x8x32xf32> to vector<1x8xf32>
    %155 = vector.shape_cast %154 : vector<1x8xf32> to vector<1x8x1xf32>
    %cst_83 = arith.constant 3.200000e+01 : f32
    %156 = vector.broadcast %cst_83 : f32 to vector<1x8x1xf32>
    %157 = arith.divf %155, %156 : vector<1x8x1xf32>
    %158 = arith.mulf %151, %151 : vector<1x8x32xf32>
    %cst_84 = arith.constant dense<0.000000e+00> : vector<1x8xf32>
    %159 = vector.multi_reduction <add>, %158, %cst_84 [2] : vector<1x8x32xf32> to vector<1x8xf32>
    %160 = vector.shape_cast %159 : vector<1x8xf32> to vector<1x8x1xf32>
    %cst_85 = arith.constant 3.200000e+01 : f32
    %161 = vector.broadcast %cst_85 : f32 to vector<1x8x1xf32>
    %162 = arith.divf %160, %161 : vector<1x8x1xf32>
    %163 = arith.mulf %157, %157 : vector<1x8x1xf32>
    %164 = arith.subf %162, %163 : vector<1x8x1xf32>
    %cst_86 = arith.constant 9.99999974E-6 : f32
    %165 = vector.broadcast %cst_86 : f32 to vector<1x8x1xf32>
    %166 = arith.addf %164, %165 : vector<1x8x1xf32>
    %167 = math.rsqrt %166 : vector<1x8x1xf32>
    %168 = vector.broadcast %157 : vector<1x8x1xf32> to vector<1x8x32xf32>
    %169 = arith.subf %151, %168 : vector<1x8x32xf32>
    %170 = vector.broadcast %167 : vector<1x8x1xf32> to vector<1x8x32xf32>
    %171 = arith.mulf %169, %170 : vector<1x8x32xf32>
    %172 = vector.shape_cast %152 : vector<1x32xf32> to vector<1x1x32xf32>
    %173 = vector.broadcast %172 : vector<1x1x32xf32> to vector<1x8x32xf32>
    %174 = arith.mulf %171, %173 : vector<1x8x32xf32>
    %175 = vector.shape_cast %153 : vector<1x32xf32> to vector<1x1x32xf32>
    %176 = vector.broadcast %175 : vector<1x1x32xf32> to vector<1x8x32xf32>
    %177 = arith.addf %174, %176 : vector<1x8x32xf32>
    %c0_87 = arith.constant 0 : index
    %c0_88 = arith.constant 0 : index
    %c0_89 = arith.constant 0 : index
    %178 = vector.load %arg20[%c0_87, %c0_88, %c0_89] : memref<1x8x32xf32, #tpu.memory_space<vmem>>, vector<1x8x32xf32>
    tpu.vector_store %arg20[%c0_87, %c0_88, %c0_89], %177 {strides = array<i32>} : memref<1x8x32xf32, #tpu.memory_space<vmem>>, vector<1x8x32xf32>,
    return
  }
  func.func @transform_0(%arg0: i32) -> (i32, i32, i32) {
    %c0_i32 = arith.constant 0 : i32
    %c0_i32_0 = arith.constant 0 : i32
    %c0_i32_1 = arith.constant 0 : i32
    return %arg0, %c0_i32, %c0_i32_0 : i32, i32, i32
  }
  func.func @transform_1(%arg0: i32) -> (i32, i32, i32) {
    %c0_i32 = arith.constant 0 : i32
    %c0_i32_0 = arith.constant 0 : i32
    %c0_i32_1 = arith.constant 0 : i32
    return %arg0, %c0_i32, %c0_i32_0 : i32, i32, i32
  }
  func.func @transform_2(%arg0: i32) -> (i32, i32, i32) {
    %c0_i32 = arith.constant 0 : i32
    %c0_i32_0 = arith.constant 0 : i32
    %c0_i32_1 = arith.constant 0 : i32
    return %arg0, %c0_i32, %c0_i32_0 : i32, i32, i32
  }
  func.func @transform_3(%arg0: i32) -> (i32, i32) {
    %c0_i32 = arith.constant 0 : i32
    %c0_i32_0 = arith.constant 0 : i32
    %c0_i32_1 = arith.constant 0 : i32
    return %c0_i32, %c0_i32_0 : i32, i32
  }
  func.func @transform_4(%arg0: i32) -> (i32, i32) {
    %c0_i32 = arith.constant 0 : i32
    %c0_i32_0 = arith.constant 0 : i32
    %c0_i32_1 = arith.constant 0 : i32
    return %c0_i32, %c0_i32_0 : i32, i32
  }
  func.func @transform_5(%arg0: i32) -> (i32, i32) {
    %c0_i32 = arith.constant 0 : i32
    %c0_i32_0 = arith.constant 0 : i32
    %c0_i32_1 = arith.constant 0 : i32
    return %c0_i32, %c0_i32_0 : i32, i32
  }
  func.func @transform_6(%arg0: i32) -> (i32, i32) {
    %c0_i32 = arith.constant 0 : i32
    %c0_i32_0 = arith.constant 0 : i32
    %c0_i32_1 = arith.constant 0 : i32
    return %c0_i32, %c0_i32_0 : i32, i32
  }
  func.func @transform_7(%arg0: i32) -> (i32, i32) {
    %c0_i32 = arith.constant 0 : i32
    %c0_i32_0 = arith.constant 0 : i32
    %c0_i32_1 = arith.constant 0 : i32
    return %c0_i32, %c0_i32_0 : i32, i32
  }
  func.func @transform_8(%arg0: i32) -> (i32, i32) {
    %c0_i32 = arith.constant 0 : i32
    %c0_i32_0 = arith.constant 0 : i32
    %c0_i32_1 = arith.constant 0 : i32
    return %c0_i32, %c0_i32_0 : i32, i32
  }
  func.func @transform_9(%arg0: i32) -> (i32, i32, i32) {
    %c0_i32 = arith.constant 0 : i32
    %c0_i32_0 = arith.constant 0 : i32
    %c0_i32_1 = arith.constant 0 : i32
    %c0_i32_2 = arith.constant 0 : i32
    return %c0_i32, %c0_i32_0, %c0_i32_1 : i32, i32, i32
  }
  func.func @transform_10(%arg0: i32) -> (i32, i32) {
    %c0_i32 = arith.constant 0 : i32
    %c0_i32_0 = arith.constant 0 : i32
    %c0_i32_1 = arith.constant 0 : i32
    return %c0_i32, %c0_i32_0 : i32, i32
  }
  func.func @transform_11(%arg0: i32) -> (i32, i32) {
    %c0_i32 = arith.constant 0 : i32
    %c0_i32_0 = arith.constant 0 : i32
    %c0_i32_1 = arith.constant 0 : i32
    return %c0_i32, %c0_i32_0 : i32, i32
  }
  func.func @transform_12(%arg0: i32) -> (i32, i32) {
    %c0_i32 = arith.constant 0 : i32
    %c0_i32_0 = arith.constant 0 : i32
    %c0_i32_1 = arith.constant 0 : i32
    return %c0_i32, %c0_i32_0 : i32, i32
  }
  func.func @transform_13(%arg0: i32) -> (i32, i32) {
    %c0_i32 = arith.constant 0 : i32
    %c0_i32_0 = arith.constant 0 : i32
    %c0_i32_1 = arith.constant 0 : i32
    return %c0_i32, %c0_i32_0 : i32, i32
  }
  func.func @transform_14(%arg0: i32) -> (i32, i32) {
    %c0_i32 = arith.constant 0 : i32
    %c0_i32_0 = arith.constant 0 : i32
    %c0_i32_1 = arith.constant 0 : i32
    return %c0_i32, %c0_i32_0 : i32, i32
  }
  func.func @transform_15(%arg0: i32) -> (i32, i32) {
    %c0_i32 = arith.constant 0 : i32
    %c0_i32_0 = arith.constant 0 : i32
    %c0_i32_1 = arith.constant 0 : i32
    return %c0_i32, %c0_i32_0 : i32, i32
  }
  func.func @transform_16(%arg0: i32) -> (i32, i32) {
    %c0_i32 = arith.constant 0 : i32
    %c0_i32_0 = arith.constant 0 : i32
    %c0_i32_1 = arith.constant 0 : i32
    return %c0_i32, %c0_i32_0 : i32, i32
  }
  func.func @transform_17(%arg0: i32) -> (i32, i32) {
    %c0_i32 = arith.constant 0 : i32
    %c0_i32_0 = arith.constant 0 : i32
    %c0_i32_1 = arith.constant 0 : i32
    return %c0_i32, %c0_i32_0 : i32, i32
  }
  func.func @transform_18(%arg0: i32) -> (i32, i32) {
    %c0_i32 = arith.constant 0 : i32
    %c0_i32_0 = arith.constant 0 : i32
    %c0_i32_1 = arith.constant 0 : i32
    return %c0_i32, %c0_i32_0 : i32, i32
  }
  func.func @transform_19(%arg0: i32) -> (i32, i32, i32) {
    %c0_i32 = arith.constant 0 : i32
    %c0_i32_0 = arith.constant 0 : i32
    %c0_i32_1 = arith.constant 0 : i32
    return %arg0, %c0_i32, %c0_i32_0 : i32, i32, i32
  }
}

</mosaic_0001>

<bundles_post_ra>
// kernel: tpu_custom_call.1
= control target key start
LH: loop header
LB: loop body
LE: loop exit
PB: predicated region body
PF: predicated region fallthrough
CT: control target
= control target key end

     0   :  { %s3456_s0 = inlined_call_operand.hbm [shape: f32[2,8,32], index: 0, kind: input, shape index: {}]   ;;  %s3457_s1 = inlined_call_operand.hbm [shape: f32[2,8,32], index: 1, kind: input, shape index: {}]   ;;  %s3458_s2 = inlined_call_operand.hbm [shape: f32[2,8,32], index: 2, kind: input, shape index: {}]   ;;  %s3459_s3 = inlined_call_operand.vmem [shape: f32[32,32], index: 3, kind: input, shape index: {}]   ;;  %s3460_s4 = inlined_call_operand.vmem [shape: f32[1,32], index: 4, kind: input, shape index: {}]   ;;  %s3461_s5 = inlined_call_operand.vmem [shape: f32[32,32], index: 5, kind: input, shape index: {}]   ;;  %s3462_s6 = inlined_call_operand.vmem [shape: f32[1,32], index: 6, kind: input, shape index: {}]   ;;  %s3463_s7 = inlined_call_operand.vmem [shape: f32[32,32], index: 7, kind: input, shape index: {}]   ;;  %s3464_s8 = inlined_call_operand.vmem [shape: f32[1,32], index: 8, kind: input, shape index: {}]   ;;  %s3465_s9 = inlined_call_operand.hbm [shape: f32[4,8,32], index: 9, kind: input, shape index: {}]   ;;  %s3466_s10 = inlined_call_operand.vmem [shape: f32[1,32], index: 10, kind: input, shape index: {}]   ;;  %s3467_s11 = inlined_call_operand.vmem [shape: f32[1,32], index: 11, kind: input, shape index: {}]   ;;  %s3468_s12 = inlined_call_operand.vmem [shape: f32[1,32], index: 12, kind: input, shape index: {}]   ;;  %s3469_s13 = inlined_call_operand.hbm [shape: f32[32,64], index: 13, kind: input, shape index: {}]   ;;  %s3470_s14 = inlined_call_operand.vmem [shape: f32[1,64], index: 14, kind: input, shape index: {}]   ;;  %s3471_s15 = inlined_call_operand.vmem [shape: f32[64,32], index: 15, kind: input, shape index: {}]   ;;  %s3472_s16 = inlined_call_operand.vmem [shape: f32[1,32], index: 16, kind: input, shape index: {}]   ;;  %s3473_s17 = inlined_call_operand.vmem [shape: f32[1,32], index: 17, kind: input, shape index: {}]   ;;  %s3474_s18 = inlined_call_operand.vmem [shape: f32[1,32], index: 18, kind: input, shape index: {}]   ;;  %s3475_s19 = inlined_call_operand.hbm [shape: f32[2,8,32], index: 19, kind: output, shape index: {}]  }
   0x1   :  { %3502 = sst [smem:[#allocation23_spill]] %s3456_s0 }
   0x2   :  { %3503 = sst [smem:[#allocation24_spill]] %s3457_s1 }
   0x3   :  { %3504 = sst [smem:[#allocation25_spill]] %s3458_s2 }
   0x4   :  { %3505 = sst [smem:[#allocation26_spill]] %s3459_s3 }
   0x5   :  { %3506 = sst [smem:[#allocation27_spill]] %s3465_s9 }
   0x6   :  { %3507 = sst [smem:[#allocation28_spill]] %s3467_s11 }
   0x7   :  { %3508 = sst [smem:[#allocation29_spill]] %s3468_s12 }
   0x8   :  { %3509 = sst [smem:[#allocation30_spill]] %s3469_s13 }
   0x9   :  { %3510 = sst [smem:[#allocation31_spill]] %s3470_s14 }
   0xa   :  { %3511 = sst [smem:[#allocation32_spill]] %s3471_s15 }
   0xb   :  { %3512 = sst [smem:[#allocation33_spill]] %s3472_s16 }
   0xc   :  { %3513 = sst [smem:[#allocation34_spill]] %s3473_s17 }
   0xd   :  { %3514 = sst [smem:[#allocation35_spill]] %s3474_s18 }
   0xe   :  { %3515 = sst [smem:[#allocation36_spill]] %s3475_s19 }
   0xf   :  { %24 = vsyncpa [#allocation3], 0 }
  0x10   :  { %26 = vsyncpa [#allocation3 + $0x1], 0 }
  0x11   :  { %27 = vsyncpa [#allocation6], 0 }
  0x12   :  { %29 = vsyncpa [#allocation6 + $0x1], 0 }
  0x13   :  { %30 = vsyncpa [#allocation9], 0 }
  0x14   :  { %31 = vsyncpa [#allocation4], 0 }
  0x15   :  { %33 = vsyncpa [#allocation4 + $0x1], 0  ;;  %s2986_s0 = smov 0   ;;  %s2988_s30 = smov 0  }
  0x16   :  { %s2990_s20 = smov 0   ;;  %s2992_s21 = smov 0  }
  0x17 LB: > { %3516 = sst [smem:[#allocation16_spill]] %s2859_s0  ;;  %s3007_s1 = sadd.s32 4294967295, %s2871_s21   ;;  %s2871_s21 = sphi %s2992_s21, %s3562_s21   ;;  %s2867_s20 = sphi %s2990_s20, %s3564_s20   ;;  %s2863_s30 = sphi %s2988_s30, %s3566_s30   ;;  %s2859_s0 = sphi %s2986_s0, %s3565_s0  }
  0x18   : > { %3517 = sst [smem:[#allocation17_spill]] %s2867_s20  ;;  %s2330_s22 = sadd.s32 4294967294, %s2871_s21  }
  0x19   : > { %3518 = sst [smem:[#allocation18_spill]] %s2871_s21  ;;  %p59_p0 = scmp.ne.s32.totalorder %s2863_s30, %s2859_s0 }
  0x1a   : > { %p3491_p1 = scmp.eq.s32.totalorder %s3007_s1, 0  ;;  %p471_p2 = scmp.eq.s32.totalorder %s3007_s1, 1 }
  0x1b   : > { %p477_p3 = scmp.eq.s32.totalorder %s2330_s22, 1  ;;  %p2331_p5 = scmp.ge.s32.totalorder %s2871_s21, 1 }
  0x1c   : > { %p3016_p4 = por %p3491_p1, %p59_p0  ;;  %p484_p7 = scmp.lt.s32.totalorder %s2871_s21, 3 }
  0x1d   : > { %p3021_p6 = por %p477_p3, %p59_p0  ;;  %s2873_s25 = smov [#allocation8]  }
  0x1e   : > { %s3519_s2 = scalar_select %p3016_p4, 1, 0 }
  0x1f   : > { %s3520_s23 = scalar_select %p3021_p6, 1, 0 }
  0x20   : > { %p3026_p8 = pnand %p2331_p5, %p484_p7  ;;  %s514_s3 = sshll.u32 %s2873_s25, 4  ;;  %s515_s3 = int_to_ptr.vmem [resolvable:$true] %s514_s3 }
  0x21   : > { %3521 = sst [smem:[#allocation19_spill]] %s3520_s23  ;;  %s3040_s27 = sadd.s32 1, %s2871_s21  }
  0x22   : > { %s3522_s24 = scalar_select %p3026_p8, 1, 0 }
  0x23   : > { %p2575_p9 = pneg %p3026_p8  ;;  %3524 = sst [smem:[#allocation20_spill]] %s3040_s27 }
  0x24   : > { %s46_s28 = sadd.s32 1, %s2867_s20  ;;  %s43_s29 = ssub.s32 %s2871_s21, %s3040_s27 }
  0x25   : > { %p3035_p11 = pnand %p2575_p9, %p3491_p1  ;;  %s2674_s22 = scalar_lea.vmem %s515_s3, 512 }
  0x26   : > { %p2675_p13 = scmp.ne.s32.totalorder %s515_s3, %s2674_s22  ;;  %p2682_p5 = scmp.lt.s32.totalorder %s515_s3, %s515_s3 }
  0x27   : > { %s3523_s26 = scalar_select %p3035_p11, 1, 0 }
  0x28   : > { %p3492_p12 = pneg %p3035_p11  ;;  %p2683_p7 = scmp.lt.s32.totalorder %s2674_s22, %s2674_s22 }
  0x2a   : > { %p2677_p0 = pnand %p2675_p13, %p3492_p12  ;;  %p2684_p9 = por %p2683_p7, %p2682_p5 }
  0x2c   : > { %p2678_p3 = pneg %p2677_p0 }
  0x2e   : > { %p2685_p10 = pnand %p2684_p9, %p2678_p3 }
  0x30   : > { %2688 = shalt.err (!%p2685_p10)
}
  0x31   : > { %s3485_s25 = smov 128   ;;  %s3486_s27 = smov 8  }
  0x32   : > { %s3525_s9 = sld [smem:[#allocation27_spill]]  ;;  %p44_p10 = scmp.eq.s32.totalorder %s43_s29, 0 }
  0x33   : > { %p53_p13 = scmp.ne.s32.totalorder %s2867_s20, %s2863_s30  ;;  %p54_p0 = scmp.eq.s32.totalorder %s2871_s21, 0 }
  0x34   : > { %p2598_p3 = scmp.lt.s32.totalorder %s2871_s21, 2  ;;  %s3487_s18 = sand.u32 1, %s2867_s20  }
  0x35   : > { %s3063_s0 = scalar_select %p44_p10, %s2867_s20, %s46_s28  }
  0x36   : > { %p55_p5 = por %p54_p0, %p53_p13  ;;  %p3067_p7 = por %p471_p2, %p53_p13 }
  0x37   : > { %3526 = sst [smem:[#allocation21_spill]] %s3063_s0  ;;  %s3073_s17 = sshll.u32 %s2871_s21, 7 }
  0x38   : > { %2578 = dma.hbm_to_vmem [thread:$0]  (!%p3035_p11), %s3525_s9, 512, %s515_s3, [#allocation9], %s3485_s25, %s3485_s25, %s3486_s27  }
  0x39   : > { %s3527_s19 = scalar_select %p3067_p7, 1, 0 }
  0x3a   : > { %s3077_s16 = sshll.u32 %s3487_s18, 3  ;;  %p3079_p9 = pnand %p2598_p3, %p55_p5 }
  0x3b   : > { %3528 = sst [smem:[#allocation22_spill]] %s3527_s19  ;;  %s583_s3 = sand.u32 1, %s2871_s21  }
  0x3c   : > { %s3530_s22 = sld [smem:[#allocation24_spill]]  ;;  %s587_s27 = scalar_lea.vmem [#allocation5], %s3077_s16 }
  0x3d   : > { %s594_s9 = sshll.u32 %s587_s27, 4  ;;  %s3091_s18 = scalar_lea.sflag [#allocation6], %s583_s3  ;;  %s595_s9 = int_to_ptr.vmem [resolvable:$true] %s594_s9 }
  0x3e   : > { %p3097_p10 = pneg %p3079_p9 }
  0x42   : > { %s3088_s25 = scalar_lea.hbm %s3530_s22, %s3073_s17  ;;  %s2694_s21 = scalar_lea.hbm %s3530_s22, 256 }
  0x43   : > { %s2689_s0 = scalar_lea.hbm %s3088_s25, 128  ;;  %p2695_p3 = scmp.lt.s32.totalorder %s3088_s25, %s3530_s22 }
  0x44   : > { %p2690_p2 = scmp.ne.s32.totalorder %s3088_s25, %s2689_s0  ;;  %p2696_p5 = scmp.lt.s32.totalorder %s2694_s21, %s2689_s0 }
  0x46   : > { %p2692_p13 = pnand %p3097_p10, %p2690_p2  ;;  %p2697_p1 = por %p2696_p5, %p2695_p3 }
  0x48   : > { %p2693_p0 = pneg %p2692_p13 }
  0x4a   : > { %p2698_p12 = pnand %p2697_p1, %p2693_p0 }
  0x4c   : > { %2701 = shalt.err (!%p2698_p12)
}
  0x4d   : > { %s2702_s3 = scalar_lea.vmem %s595_s9, 128  ;;  %s2876_s12 = smov [#allocation5]  }
  0x4e   : > { %p2703_p6 = scmp.ne.s32.totalorder %s595_s9, %s2702_s3  ;;  %s2707_s11 = sshll.u32 %s2876_s12, 4  ;;  %s2708_s11 = int_to_ptr.vmem [resolvable:$false] %s2707_s11 }
  0x4f   : > { %s2709_s15 = scalar_lea.vmem %s2708_s11, 256  ;;  %p2710_p2 = scmp.lt.s32.totalorder %s595_s9, %s2708_s11 }
  0x50   : > { %p2705_p7 = pnand %p2703_p6, %p3097_p10  ;;  %p2711_p13 = scmp.lt.s32.totalorder %s2709_s15, %s2702_s3 }
  0x52   : > { %p2706_p4 = pneg %p2705_p7  ;;  %p2712_p8 = por %p2711_p13, %p2710_p2 }
  0x54   : > { %p2713_p11 = pnand %p2712_p8, %p2706_p4 }
  0x56   : > { %2716 = shalt.err (!%p2713_p11)
}
  0x57   : > { %2588 = dma.hbm_to_vmem [thread:$0]  (!%p3079_p9), %s3088_s25, 128, %s595_s9, %s3091_s18  }
  0x58   : > { %s2877_s14 = smov [#allocation10]   ;;  %p3532_p6 = scmp.ne.s32.totalorder %s3523_s26, 0 }
  0x59   : > { %s536_s0 = sshll.u32 %s2877_s14, 4  ;;  %s537_s0 = int_to_ptr.vmem [resolvable:$true] %s536_s0 }
  0x5a   : > { %s2728_s21 = scalar_lea.vmem %s537_s0, 512  ;;  %p3533_p12 = pneg %p3532_p6 }
  0x5b   : > { %p2729_p1 = scmp.ne.s32.totalorder %s537_s0, %s2728_s21  ;;  %p2736_p3 = scmp.lt.s32.totalorder %s537_s0, %s537_s0 }
  0x5c   : > { %p2737_p5 = scmp.lt.s32.totalorder %s2728_s21, %s2728_s21 }
  0x5d   : > { %p2731_p7 = pnand %p2729_p1, %p3533_p12 }
  0x5e   : > { %p2738_p2 = por %p2737_p5, %p2736_p3 }
  0x5f   : > { %p2732_p0 = pneg %p2731_p7 }
  0x61   : > { %p2739_p4 = pnand %p2738_p2, %p2732_p0 }
  0x63   : > { %2742 = shalt.err (!%p2739_p4)
}
  0x64   : > { %s3534_s11 = smov 8   ;;  %s3535_s12 = smov 128  }
  0x65   : > { %s3536_s13 = sld [smem:[#allocation30_spill]]  ;;  %s569_s26 = scalar_lea.vmem [#allocation2], %s3077_s16 }
  0x66   : > { %s3537_s29 = sld [smem:[#allocation23_spill]]  ;;  %s576_s3 = sshll.u32 %s569_s26, 4  ;;  %s577_s3 = int_to_ptr.vmem [resolvable:$true] %s576_s3 }
  0x67   : > { %s3538_s14 = sand.u32 1, %s2867_s20  }
  0x68   : > { %s566_s21 = scalar_lea.sflag [#allocation3], %s3538_s14 }
  0x6b   : > { %2581 = dma.hbm_to_vmem [thread:$0]  (!%p3532_p6), %s3536_s13, 512, %s537_s0, [#allocation9], %s3535_s12, %s3535_s12, %s3534_s11  }
  0x6c   : > { %s3131_s27 = scalar_lea.hbm %s3537_s29, %s3073_s17  ;;  %s2748_s11 = scalar_lea.hbm %s3537_s29, 256 }
  0x6d   : > { %s2743_s22 = scalar_lea.hbm %s3131_s27, 128  ;;  %p2749_p1 = scmp.lt.s32.totalorder %s3131_s27, %s3537_s29 }
  0x6e   : > { %p2744_p8 = scmp.ne.s32.totalorder %s3131_s27, %s2743_s22  ;;  %p2750_p6 = scmp.lt.s32.totalorder %s2748_s11, %s2743_s22 }
  0x70   : > { %p2746_p11 = pnand %p2744_p8, %p3097_p10  ;;  %p2751_p12 = por %p2750_p6, %p2749_p1 }
  0x72   : > { %p2747_p13 = pneg %p2746_p11 }
  0x74   : > { %p2752_p7 = pnand %p2751_p12, %p2747_p13 }
  0x76   : > { %2755 = shalt.err (!%p2752_p7)
}
  0x77   : > { %s2756_s25 = scalar_lea.vmem %s577_s3, 128  ;;  %s2878_s28 = smov [#allocation2]  }
  0x78   : > { %p2757_p0 = scmp.ne.s32.totalorder %s577_s3, %s2756_s25  ;;  %s2761_s26 = sshll.u32 %s2878_s28, 4  ;;  %s2762_s26 = int_to_ptr.vmem [resolvable:$false] %s2761_s26 }
  0x79   : > { %s2763_s14 = scalar_lea.vmem %s2762_s26, 256  ;;  %p2764_p2 = scmp.lt.s32.totalorder %s577_s3, %s2762_s26 }
  0x7a   : > { %p2759_p3 = pnand %p2757_p0, %p3097_p10  ;;  %p2765_p4 = scmp.lt.s32.totalorder %s2763_s14, %s2756_s25 }
  0x7c   : > { %p2760_p5 = pneg %p2759_p3  ;;  %p2766_p8 = por %p2765_p4, %p2764_p2 }
  0x7e   : > { %p2767_p11 = pnand %p2766_p8, %p2760_p5 }
  0x80   : > { %2770 = shalt.err (!%p2767_p11)
}
  0x81   : > { %2585 = dma.hbm_to_vmem [thread:$0]  (!%p3079_p9), %s3131_s27, 128, %s577_s3, %s566_s21  }
  0x82   : > { %s3539_s0 = sld [smem:[#allocation25_spill]]  ;;  %s605_s15 = scalar_lea.vmem [#allocation7], %s3077_s16 }
  0x83   : > { %s612_s28 = sshll.u32 %s605_s15, 4  ;;  %s613_s28 = int_to_ptr.vmem [resolvable:$true] %s612_s28 }
  0x88   : > { %s3540_s11 = smov %s3539_s0  ;;  %s610_s12 = scalar_lea.hbm %s3539_s0, %s3073_s17 }
  0x89   : > { %s2771_s13 = scalar_lea.hbm %s610_s12, 128  ;;  %s2776_s14 = scalar_lea.hbm %s3540_s11, 256 }
  0x8a   : > { %p2772_p13 = scmp.ne.s32.totalorder %s610_s12, %s2771_s13  ;;  %p2777_p12 = scmp.lt.s32.totalorder %s610_s12, %s3540_s11 }
  0x8b   : > { %p2778_p7 = scmp.lt.s32.totalorder %s2776_s14, %s2771_s13 }
  0x8c   : > { %p2774_p1 = pnand %p2772_p13, %p3097_p10 }
  0x8d   : > { %p2779_p0 = por %p2778_p7, %p2777_p12 }
  0x8e   : > { %p2775_p6 = pneg %p2774_p1 }
  0x90   : > { %p2780_p3 = pnand %p2779_p0, %p2775_p6 }
  0x92   : > { %2783 = shalt.err (!%p2780_p3)
}
  0x93   : > { %s2784_s16 = scalar_lea.vmem %s613_s28, 128  ;;  %s2879_s17 = smov [#allocation7]  }
  0x94   : > { %p2785_p5 = scmp.ne.s32.totalorder %s613_s28, %s2784_s16  ;;  %s2789_s27 = sshll.u32 %s2879_s17, 4  ;;  %s2790_s27 = int_to_ptr.vmem [resolvable:$false] %s2789_s27 }
  0x95   : > { %s2791_s3 = scalar_lea.vmem %s2790_s27, 256  ;;  %p2792_p8 = scmp.lt.s32.totalorder %s613_s28, %s2790_s27 }
  0x96   : > { %p2787_p2 = pnand %p2785_p5, %p3097_p10  ;;  %p2793_p11 = scmp.lt.s32.totalorder %s2791_s3, %s2784_s16 }
  0x98   : > { %p2788_p4 = pneg %p2787_p2  ;;  %p2794_p13 = por %p2793_p11, %p2792_p8 }
  0x9a   : > { %p2795_p1 = pnand %p2794_p13, %p2788_p4 }
  0x9c   : > { %2798 = shalt.err (!%p2795_p1)
}
  0x9d   : > { %2591 = dma.hbm_to_vmem [thread:$0]  (!%p3079_p9), %s610_s12, 128, %s613_s28, %s3091_s18  }
  0x9e   : > { %p3541_p6 = scmp.ne.s32.totalorder %s3522_s24, 0 }
  0x9f   : > { %s3173_s13 = sand.u32 (!%p3541_p6), 1, %s2863_s30   ;;  %p3542_p10 = scmp.ne.s32.totalorder (!%p3541_p6), %s3519_s2, 0 }
  0xa0   : > { %621 = sbr.rel (%p3541_p6) target bundleno = 3353 (0xd19), region = 96  ;;  %s3176_s19 = sshll.u32 (!%p3541_p6), %s3173_s13, 3 }
  0xa1   : > { %s624_s20 = scalar_lea.sflag (!%p3541_p6), [#allocation3], %s3173_s13  ;;  %s627_s29 = scalar_lea.vmem (!%p3541_p6), [#allocation2], %s3176_s19 }
  0xa5   : > { %2842 = dma.done.wait (%p3542_p10), %s624_s20, 128  }
  0xa6   : > { %2844 = vsyncadd (%p3542_p10), %s624_s20, 4294967168  ;;  %s632_s18 = sand.u32 1, %s3007_s1   ;;  %s636_s23 = scalar_lea.vmem [#allocation5], %s3176_s19 }
  0xa7   : > { %s633_s24 = scalar_lea.sflag [#allocation6], %s632_s18 }
  0xa8   : > { %2846 = dma.done.wait (%p3542_p10), %s633_s24, 256  }
  0xa9   : > { %2848 = vsyncadd (%p3542_p10), %s633_s24, 4294967040  ;;  %s645_s21 = scalar_lea.vmem [#allocation7], %s3176_s19  ;;  %p3543_p9 = scmp.eq.s32.totalorder %s3007_s1, 0 }
  0xab   : > { %2850 = dma.done.wait (%p3543_p9), [#allocation9], 1024   ;;  %p3544_p12 = pmov %p3543_p9 }
  0xac   : > { %v2880_v0 = vmov 0.0   ;;  %vm2881_vm0 = vmmov 0   ;;  %v809_v1 = vld [vmem:[%s3461_s5 + $0x18] sm:$0xff]  ;;  %s3545_s12 = sld [smem:[#allocation26_spill]]  ;;  %v808_v3 = vld [vmem:[%s3461_s5 + $0x10] sm:$0xff]  ;;  %v807_v5 = vld [vmem:[%s3461_s5 + $0x8] sm:$0xff] }
  0xad   : > { %2852 = vsyncadd (%p3544_p12), [#allocation9], 4294966272  ;;  %2447 = vmatprep.subr.mxu1 %v2880_v0  ;;  %2436 = vmatprep.subr.mxu0 %v2880_v0  ;;  %v806_v7 = vld [vmem:[%s3461_s5] sm:$0xff]  ;;  %v719_v9 = vld [vmem:[%s636_s23] sm:$0xff]  ;;  %vm732_vm1 = vcmask 261120   ;;  %vm974_vm2 = vcmask 64512  }
  0xae   : > { %2455 = vmatprep.mubr.msk.f32.mxu1 %vm2881_vm0, %v2880_v0  ;;  %2444 = vmatprep.mubr.msk.f32.mxu0 %vm2881_vm0, %v2880_v0  ;;  %v3231_v10 = vld [vmem:[%s627_s29] sm:$0xff]  ;;  %v893_v11 = vld [vmem:[%s3463_s7 + $0x18] sm:$0xff]  ;;  %v892_v12 = vld [vmem:[%s3463_s7 + $0x10] sm:$0xff]  ;;  %s2883_s3 = smov 112   ;;  %s2884_s20 = smov 104   ;;  %vm2077_vm3 = vcmask 523264  }
  0xaf   : > { %2448 = vmatpush3.msra.mxu1 %v809_v1  ;;  %v891_v13 = vld [vmem:[%s3463_s7 + $0x8] sm:$0xff]  ;;  %v890_v14 = vld [vmem:[%s3463_s7] sm:$0xff]  ;;  %v1305_v51 = vld [vmem:[#allocation8 + $0x8] sm:$0xff]  ;;  %s3546_s29 = sld [smem:[#allocation32_spill]]  ;;  %s2380_s24 = sshll.u32 %s3007_s1, 7 }
  0xb0   : > { %2449 = vmatprep.subr.mxu1 %v2880_v0  ;;  %v720_v15 = vld [vmem:[%s645_s21] sm:$0xff]  ;;  %s2882_s21 = smov 120   ;;  %v1136_v56 = vld [vmem:[#allocation8] sm:$0xff]  ;;  %s3547_s17 = sld [smem:[#allocation28_spill]] }
  0xb1   : > { %2450 = vmatpush3.msra.mxu1 %v808_v3  ;;  %v2350_v16 = vld [vmem:[%s3462_s6] ss:$0 sm:$0xff]  ;;  %s3549_s28 = sld [smem:[#allocation31_spill]]  ;;  %s717_s2 = scalar_lea.vmem [#allocation11], %s3176_s19 }
  0xb2   : > { %v724_v2 = vld [vmem:[%s3545_s12 + $0x18] sm:$0xff]  ;;  %v723_v4 = vld [vmem:[%s3545_s12 + $0x10] sm:$0xff]  ;;  %v722_v6 = vld [vmem:[%s3545_s12 + $0x8] sm:$0xff]  ;;  %2451 = vmatprep.subr.mxu1 %v2880_v0  ;;  %s3550_s14 = sld [smem:[#allocation33_spill]]  ;;  %s2198_s22 = sshll.u32 %s717_s2, 4  ;;  %s2199_s22 = int_to_ptr.vmem [resolvable:$true] %s2198_s22 }
  0xb3   : > { %2437 = vmatpush3.msra.mxu0 %v724_v2  ;;  %v721_v8 = vld [vmem:[%s3545_s12] sm:$0xff]  ;;  %2452 = vmatpush3.msra.mxu1 %v807_v5  ;;  %s3551_s16 = sld [smem:[#allocation22_spill]]  ;;  %s2185_s25 = scalar_lea.sflag [#allocation4], %s3173_s13 }
  0xb4   : > { %2438 = vmatprep.subr.mxu0 %v2880_v0  ;;  %2453 = vmatprep.subr.mxu1 %v2880_v0  ;;  %v2348_v17 = vld [vmem:[%s3460_s4] ss:$0 sm:$0xff]  ;;  %s3552_s27 = sld [smem:[#allocation34_spill]]  ;;  %s2799_s26 = scalar_lea.vmem %s2199_s22, 128 }
  0xb5   : > { %2439 = vmatpush3.msra.mxu0 %v723_v4  ;;  %2454 = vmatpush3.msra.mxu1 %v806_v7  ;;  %v2352_v24 = vld [vmem:[%s3464_s8] ss:$0 sm:$0xff]  ;;  %s3553_s18 = sld [smem:[#allocation35_spill]]  ;;  %p2800_p7 = scmp.ne.s32.totalorder %s2199_s22, %s2799_s26 }
  0xb6   : > { %2440 = vmatprep.subr.mxu0 %v2880_v0  ;;  %2456 = vmatmul.mubr.msk.f32.vlgmr.msra.gmra.mxu1 %vm732_vm1, %v719_v9  ;;  %s3554_s0 = sld [smem:[#allocation36_spill]] }
  0xb7   : > { %2441 = vmatpush3.msra.mxu0 %v722_v6  ;;  %2474 = vmatprep.subr.mxu1 %v2880_v0 }
  0xb8   : > { %2442 = vmatprep.subr.mxu0 %v2880_v0  ;;  %2476 = vmatprep.mubr.msk.f32.mxu1 %vm2881_vm0, %v2880_v0 }
  0xb9   : > { %2443 = vmatpush3.msra.mxu0 %v721_v8  ;;  %p3556_p0 = scmp.ne.s32.totalorder %s3551_s16, 0 }
  0xba   : > { %2445 = vmatmul.mubr.msk.f32.vlgmr.msra.gmra.mxu0 %vm732_vm1, %v3231_v10  ;;  %2458 = vmatprep.subr.mxu0 %v2880_v0 }
  0xbb   : > { %2466 = vmatprep.mubr.msk.f32.mxu0 %vm2881_vm0, %v2880_v0  ;;  %2459 = vmatpush3.msra.mxu0 %v893_v11  ;;  %p2801_p3 = pnand %p2800_p7, %p3556_p0 }
  0xbc   : > { %2460 = vmatprep.subr.mxu0 %v2880_v0  ;;  %s3555_s15 = smov %s3554_s0 }
  0xbd   : > { %2461 = vmatpush3.msra.mxu0 %v892_v12  ;;  %p2802_p5 = pneg %p2801_p3 }
  0xbe   : > { %2462 = vmatprep.subr.mxu0 %v2880_v0 }
  0xbf   : > { %2463 = vmatpush3.msra.mxu0 %v891_v13 }
  0xc0   : > { %2464 = vmatprep.subr.mxu0 %v2880_v0 }
  0xc1   : > { %2465 = vmatpush3.msra.mxu0 %v890_v14 }
  0xc2   : > { %2467 = vmatmul.mubr.msk.f32.vlgmr.msra.gmra.mxu0 %vm732_vm1, %v720_v15  ;;  %2469 = vmatprep.subr.mxu0 %v2880_v0 }
  0xc3   : > { %2471 = vmatprep.mubr.msk.f32.mxu0 %vm2881_vm0, %v2880_v0 }
 0x176   : > { %v886_v18 = vpop.f32.mrf.mxu1 }
 0x177   : > { %v3271_v20 = vadd.f32 %v2350_v16, %v886_v18 }
 0x178   : > { %v2457_v22 = vpop.f32.mrf.mxu1 }
 0x179   : > { %1139 = vrot.lane.b32.xlu0 %v3271_v20, %s2882_s21  ;;  %2470 = vmatpush3.xpose.msk.msra.mxu0 %vm974_vm2, %v3271_v20 }
 0x17a   : > { %v802_v19 = vpop.f32.mrf.mxu0  ;;  %2479 = vmatprep.subr.mxu0 %v2880_v0 }
 0x17b   : > { %v3273_v21 = vadd.f32 %v2348_v17, %v802_v19 }
 0x17c   : > { %v2446_v23 = vpop.f32.mrf.mxu0 }
 0x17d   : > { %2472 = vmatmul.mubr.msk.f32.vlgmr.msra.gmra.mxu0 %vm974_vm2, %v3273_v21  ;;  %1137 = vrot.lane.b32.xlu0 %v3273_v21, %s2882_s21 }
 0x17e   : > { %2481 = vmatprep.mubr.msk.f32.mxu0 %vm2881_vm0, %v2880_v0 }
 0x182   : > { %v970_v25 = vpop.f32.mrf.mxu0 }
 0x183   : > { %v3289_v26 = vadd.f32 %v2352_v24, %v970_v25 }
 0x184   : > { %v2468_v27 = vpop.f32.mrf.mxu0 }
 0x185   : > { %2475 = vmatpush3.msra.mxu1 %v3289_v26 }
 0x186   : > { %2484 = vmatprep.subr.mxu1 %v2880_v0 }
 0x1eb   : > { %v1140_v28 = vpop.permute.xlu0 %1139 }
 0x1ec   : > { %2480 = vmatpush3.xpose.msk.msra.mxu0 %vm974_vm2, %v1140_v28 }
 0x1ed   : > { %2489 = vmatprep.subr.mxu0 %v2880_v0 }
 0x1ef   : > { %v1138_v29 = vpop.permute.xlu0 %1137 }
 0x1f0   : > { %2482 = vmatmul.mubr.msk.f32.vlgmr.msra.gmra.mxu0 %vm974_vm2, %v1138_v29 }
 0x1f1   : > { %2491 = vmatprep.mubr.msk.f32.mxu0 %vm2881_vm0, %v2880_v0  ;;  %2490 = vmatpush3.msra.mxu0 %v1305_v51 }
 0x1f2   : > { %2499 = vmatprep.subr.mxu0 %v2880_v0 }
 0x23d   : > { %v1047_v30 = vpop.f32.mrf.mxu0 }
 0x23e   : > { %v1051_v31 = vmul.f32 0.35355338, %v1047_v30 }
 0x23f   : > { %v2473_v32 = vpop.f32.mrf.mxu0 }
 0x240   : > { %v1052_v33 = vsel %vm974_vm2, %v1051_v31, -inf }
 0x241   : > { %1053 = vmax.xlane.f32.xlu1 %v1052_v33  ;;  %v1861_v33 = vld [vmem:[#allocation8 + $0x18] sm:$0xff] }
 0x2b0   : > { %v1211_v34 = vpop.f32.mrf.mxu0 }
 0x2b1   : > { %v1215_v35 = vmul.f32 0.35355338, %v1211_v34 }
 0x2b2   : > { %v2483_v36 = vpop.f32.mrf.mxu0 }
 0x2b3   : > { %v1216_v37 = vsel %vm974_vm2, %v1215_v35, -inf }
 0x2b4   : > { %1217 = vmax.xlane.f32.xlu1 %v1216_v37 }
 0x2ca   : > { %v1054_v38 = vpop.xlane.xlu1 %1053 }
 0x2cb   : > { %v1055_v39 = vsub.f32 %v1051_v31, %v1054_v38 }
 0x2cd   : > { %v1056_v40 = vmul.f32 1.442695, %v1055_v39 }
 0x2cf   : > { %2643 = vpow2.f32 %v1056_v40 }
 0x2dc   : > { %v2644_v41 = vpop.eup %2643 }
 0x2dd   : > { %v1058_v42 = vsel %vm974_vm2, %v2644_v41, 0.0 }
 0x2de   : > { %1059 = vadd.xlane.f32.xlu0 %v1058_v42 }
 0x2f4   : > { %1542 = vrot.lane.b32.xlu0 %v3289_v26, %s2883_s3 }
 0x33d   : > { %v1218_v43 = vpop.xlane.xlu1 %1217 }
 0x33e   : > { %v1219_v44 = vsub.f32 %v1215_v35, %v1218_v43 }
 0x340   : > { %v1220_v45 = vmul.f32 1.442695, %v1219_v44  ;;  %v2370_v44 = vld [vmem:[%s3466_s10] ss:$0 sm:$0xff] }
 0x342   : > { %2645 = vpow2.f32 %v1220_v45 }
 0x34f   : > { %v2646_v46 = vpop.eup %2645 }
 0x350   : > { %v1222_v47 = vsel %vm974_vm2, %v2646_v46, 0.0 }
 0x351   : > { %1223 = vadd.xlane.f32.xlu1 %v1222_v47 }
 0x362   : > { %1228 = vrot.lane.b32.xlu1 %v3289_v26, %s2882_s21 }
 0x366   : > { %1454 = vrot.lane.b32.xlu1 %v3271_v20, %s2883_s3 }
 0x367   : > { %v1060_v48 = vpop.xlane.xlu0 %1059 }
 0x368   : > { %2647 = vrcp.f32 %v1060_v48 }
 0x36a   : > { %1452 = vrot.lane.b32.xlu1 %v3273_v21, %s2883_s3 }
 0x36b   : > { %v1543_v58 = vpop.permute.xlu0 %1542 }
 0x375   : > { %v2648_v49 = vpop.eup %2647 }
 0x376   : > { %v1062_v50 = vmul.f32 %v2648_v49, %v2644_v41 }
 0x378   : > { %2477 = vmatmul.mubr.msk.f32.vlgmr.msra.gmra.mxu1 %vm974_vm2, %v1062_v50 }
 0x379   : > { %2486 = vmatprep.mubr.msk.f32.mxu1 %vm2881_vm0, %v2880_v0 }
 0x3da   : > { %v1224_v52 = vpop.xlane.xlu1 %1223 }
 0x3db   : > { %2649 = vrcp.f32 %v1224_v52  ;;  %v1980_v52 = vld [vmem:[#allocation10 + $0x18] sm:$0xff] }
 0x3de   : > { %v1229_v53 = vpop.permute.xlu1 %1228 }
 0x3df   : > { %2485 = vmatpush3.msra.mxu1 %v1229_v53  ;;  %v1979_v53 = vld [vmem:[#allocation10 + $0x10] sm:$0xff] }
 0x3e0   : > { %2494 = vmatprep.subr.mxu1 %v2880_v0 }
 0x3e2   : > { %v1455_v60 = vpop.permute.xlu1 %1454 }
 0x3e6   : > { %v1453_v63 = vpop.permute.xlu1 %1452 }
 0x3e8   : > { %v2650_v54 = vpop.eup %2649 }
 0x3e9   : > { %v1226_v55 = vmul.f32 %v2650_v54, %v2646_v46  ;;  %v1978_v54 = vld [vmem:[#allocation10 + $0x8] sm:$0xff] }
 0x3eb   : > { %2487 = vmatmul.mubr.msk.f32.vlgmr.msra.gmra.mxu1 %vm974_vm2, %v1226_v55  ;;  %v1977_v55 = vld [vmem:[#allocation10] sm:$0xff] }
 0x3ec   : > { %2495 = vmatpush3.msra.mxu1 %v1136_v56  ;;  %2496 = vmatprep.mubr.msk.f32.mxu1 %vm2881_vm0, %v2880_v0  ;;  %v2068_v56 = vld [vmem:[%s3546_s29 + $0x30] sm:$0xff] }
 0x3ed   : > { %2504 = vmatprep.subr.mxu1 %v2880_v0 }
 0x438   : > { %v1132_v57 = vpop.f32.mrf.mxu1 }
 0x439   : > { %2497 = vmatmul.mubr.msk.f32.vlgmr.msra.gmra.mxu1 %vm974_vm2, %v1132_v57  ;;  %v2067_v57 = vld [vmem:[%s3546_s29 + $0x28] sm:$0xff] }
 0x43a   : > { %2505 = vmatpush3.msra.mxu1 %v1543_v58  ;;  %v2478_v59 = vpop.f32.mrf.mxu1  ;;  %2506 = vmatprep.mubr.msk.f32.mxu1 %vm2881_vm0, %v2880_v0  ;;  %v2066_v58 = vld [vmem:[%s3546_s29 + $0x20] sm:$0xff] }
 0x43b   : > { %2514 = vmatprep.subr.mxu1 %v2880_v0  ;;  %v2065_v59 = vld [vmem:[%s3546_s29 + $0x18] sm:$0xff] }
 0x4ab   : > { %v1300_v61 = vpop.f32.mrf.mxu1 }
 0x4ac   : > { %2492 = vmatmul.mubr.msk.f32.vlgmr.msra.gmra.mxu0 %vm974_vm2, %v1300_v61 }
 0x4ad   : > { %2500 = vmatpush3.xpose.msk.msra.mxu0 %vm974_vm2, %v1455_v60  ;;  %v2488_v62 = vpop.f32.mrf.mxu1  ;;  %2501 = vmatprep.mubr.msk.f32.mxu0 %vm2881_vm0, %v2880_v0 }
 0x4ae   : > { %2509 = vmatprep.subr.mxu0 %v2880_v0 }
 0x4b0   : > { %2502 = vmatmul.mubr.msk.f32.vlgmr.msra.gmra.mxu0 %vm974_vm2, %v1453_v63 }
 0x4b1   : > { %2511 = vmatprep.mubr.msk.f32.mxu0 %vm2881_vm0, %v2880_v0 }
 0x4f9   : > { %v1448_v1 = vpop.f32.mrf.mxu1 }
 0x4fb   : > { %v2498_v2 = vpop.f32.mrf.mxu1 }
 0x56c   : > { %v1375_v3 = vpop.f32.mrf.mxu0 }
 0x56d   : > { %v1449_v34 = vadd.f32 %v1448_v1, %v1375_v3 }
 0x56e   : > { %v2493_v4 = vpop.f32.mrf.mxu0 }
 0x570   : > { %v1526_v5 = vpop.f32.mrf.mxu0 }
 0x571   : > { %v1530_v6 = vmul.f32 0.35355338, %v1526_v5 }
 0x572   : > { %v2503_v7 = vpop.f32.mrf.mxu0 }
 0x573   : > { %v1531_v8 = vsel %vm974_vm2, %v1530_v6, -inf }
 0x574   : > { %1532 = vmax.xlane.f32.xlu1 %v1531_v8 }
 0x5fd   : > { %v1533_v9 = vpop.xlane.xlu1 %1532 }
 0x5fe   : > { %v1534_v11 = vsub.f32 %v1530_v6, %v1533_v9  ;;  %v2371_v6 = vld [vmem:[%s3547_s17] ss:$0 sm:$0xff] }
 0x600   : > { %v1535_v12 = vmul.f32 1.442695, %v1534_v11 }
 0x602   : > { %2651 = vpow2.f32 %v1535_v12  ;;  %v2064_v12 = vld [vmem:[%s3546_s29 + $0x10] sm:$0xff] }
 0x60f   : > { %v2652_v13 = vpop.eup %2651 }
 0x610   : > { %v1537_v14 = vsel %vm974_vm2, %v2652_v13, 0.0 }
 0x611   : > { %1538 = vadd.xlane.f32.xlu0 %v1537_v14  ;;  %v2062_v14 = vld [vmem:[%s3546_s29] sm:$0xff] }
 0x627   : > { %1696 = vrot.lane.b32.xlu0 %v3271_v20, %s2884_s20  ;;  %v1619_v20 = vld [vmem:[#allocation8 + $0x10] sm:$0xff] }
 0x628   : > { %2510 = vmatpush3.msra.mxu0 %v1619_v20  ;;  %v2375_v20 = vld [vmem:[%s3550_s14] ss:$0 sm:$0xff]  ;;  %s2885_s14 = smov [#allocation11]  }
 0x629   : > { %2519 = vmatprep.subr.mxu0 %v2880_v0  ;;  %s2803_s21 = sshll.u32 %s2885_s14, 4  ;;  %s2804_s21 = int_to_ptr.vmem [resolvable:$false] %s2803_s21 }
 0x62a   : > { %s2805_s1 = scalar_lea.vmem %s2804_s21, 256  ;;  %p2806_p2 = scmp.lt.s32.totalorder %s2199_s22, %s2804_s21 }
 0x62b   : > { %1694 = vrot.lane.b32.xlu0 %v3273_v21, %s2884_s20  ;;  %p2807_p4 = scmp.lt.s32.totalorder %s2805_s1, %s2799_s26 }
 0x62d   : > { %p2808_p8 = por %p2807_p4, %p2806_p2 }
 0x62f   : > { %p2809_p11 = pnand %p2808_p8, %p2802_p5 }
 0x69a   : > { %v1539_v15 = vpop.xlane.xlu0 %1538 }
 0x69b   : > { %2653 = vrcp.f32 %v1539_v15  ;;  %v2373_v15 = vld [vmem:[%s3549_s28] ss:$0 sm:$0xff]  ;;  %s2196_s28 = scalar_lea.hbm %s3554_s0, %s2380_s24 }
 0x69e   : > { %v1697_v17 = vpop.permute.xlu0 %1696 }
 0x6a2   : > { %v1695_v19 = vpop.permute.xlu0 %1694 }
 0x6a8   : > { %v2654_v16 = vpop.eup %2653 }
 0x6a9   : > { %v1541_v18 = vmul.f32 %v2654_v16, %v2652_v13  ;;  %v2063_v13 = vld [vmem:[%s3546_s29 + $0x8] sm:$0xff] }
 0x6ab   : > { %2507 = vmatmul.mubr.msk.f32.vlgmr.msra.gmra.mxu1 %vm974_vm2, %v1541_v18 }
 0x6ac   : > { %2515 = vmatpush3.xpose.msk.msra.mxu1 %vm974_vm2, %v1697_v17  ;;  %2516 = vmatprep.mubr.msk.f32.mxu1 %vm2881_vm0, %v2880_v0 }
 0x6ad   : > { %2524 = vmatprep.subr.mxu1 %v2880_v0 }
 0x6af   : > { %2517 = vmatmul.mubr.msk.f32.vlgmr.msra.gmra.mxu1 %vm974_vm2, %v1695_v19 }
 0x6b0   : > { %2526 = vmatprep.mubr.msk.f32.mxu1 %vm2881_vm0, %v2880_v0  ;;  %2525 = vmatpush3.msra.mxu1 %v1861_v33 }
 0x6b1   : > { %2540 = vmatprep.subr.mxu1 %v2880_v0 }
 0x76b   : > { %v1614_v21 = vpop.f32.mrf.mxu1 }
 0x76c   : > { %2512 = vmatmul.mubr.msk.f32.vlgmr.msra.gmra.mxu0 %vm974_vm2, %v1614_v21 }
 0x76d   : > { %v2508_v22 = vpop.f32.mrf.mxu1  ;;  %2521 = vmatprep.mubr.msk.f32.mxu0 %vm2881_vm0, %v2880_v0 }
 0x76f   : > { %v1768_v23 = vpop.f32.mrf.mxu1 }
 0x770   : > { %v1772_v24 = vmul.f32 0.35355338, %v1768_v23 }
 0x771   : > { %v2518_v25 = vpop.f32.mrf.mxu1 }
 0x772   : > { %v1773_v27 = vsel %vm974_vm2, %v1772_v24, -inf }
 0x773   : > { %1774 = vmax.xlane.f32.xlu0 %v1773_v27 }
 0x7fc   : > { %v1775_v28 = vpop.xlane.xlu0 %1774 }
 0x7fd   : > { %v1776_v29 = vsub.f32 %v1772_v24, %v1775_v28 }
 0x7ff   : > { %v1777_v30 = vmul.f32 1.442695, %v1776_v29 }
 0x801   : > { %2655 = vpow2.f32 %v1777_v30 }
 0x80e   : > { %v2656_v31 = vpop.eup %2655 }
 0x80f   : > { %v1779_v32 = vsel %vm974_vm2, %v2656_v31, 0.0 }
 0x810   : > { %1780 = vadd.xlane.f32.xlu1 %v1779_v32 }
 0x821   : > { %1784 = vrot.lane.b32.xlu1 %v3289_v26, %s2884_s20  ;;  %s3548_s20 = sld [smem:[#allocation29_spill]] }
 0x827   : > { %v2372_v8 = vld [vmem:[%s3548_s20] ss:$0 sm:$0xff] }
 0x82c   : > { %v1689_v35 = vpop.f32.mrf.mxu0 }
 0x82d   : > { %v1693_v36 = vadd.f32 %v1689_v35, %v1449_v34 }
 0x82e   : > { %v2513_v37 = vpop.f32.mrf.mxu0 }
 0x82f   : > { %v2377_v37 = vld [vmem:[%s3552_s27] ss:$0 sm:$0xff] }
 0x899   : > { %v1781_v38 = vpop.xlane.xlu1 %1780 }
 0x89a   : > { %2657 = vrcp.f32 %v1781_v38 }
 0x89d   : > { %v1785_v39 = vpop.permute.xlu1 %1784 }
 0x89e   : > { %2520 = vmatpush3.msra.mxu0 %v1785_v39  ;;  %v2378_v39 = vld [vmem:[%s3553_s18] ss:$0 sm:$0xff] }
 0x89f   : > { %2529 = vmatprep.subr.mxu0 %v2880_v0 }
 0x8a7   : > { %v2658_v40 = vpop.eup %2657 }
 0x8a8   : > { %v1783_v41 = vmul.f32 %v2658_v40, %v2656_v31 }
 0x8aa   : > { %2522 = vmatmul.mubr.msk.f32.vlgmr.msra.gmra.mxu0 %vm974_vm2, %v1783_v41 }
 0x8ab   : > { %2537 = vmatprep.mubr.msk.f32.mxu0 %vm2881_vm0, %v2880_v0  ;;  %2530 = vmatpush3.msra.mxu0 %v1980_v52 }
 0x8ac   : > { %2531 = vmatprep.subr.mxu0 %v2880_v0 }
 0x8ad   : > { %2532 = vmatpush3.msra.mxu0 %v1979_v53 }
 0x8ae   : > { %2533 = vmatprep.subr.mxu0 %v2880_v0 }
 0x8af   : > { %2534 = vmatpush3.msra.mxu0 %v1978_v54 }
 0x8b0   : > { %2535 = vmatprep.subr.mxu0 %v2880_v0 }
 0x8b1   : > { %2536 = vmatpush3.msra.mxu0 %v1977_v55 }
 0x96a   : > { %v1856_v26 = vpop.f32.mrf.mxu0 }
 0x96b   : > { %2527 = vmatmul.mubr.msk.f32.vlgmr.msra.gmra.mxu1 %vm974_vm2, %v1856_v26 }
 0x96c   : > { %v2523_v42 = vpop.f32.mrf.mxu0  ;;  %2556 = vmatprep.mubr.msk.f32.mxu1 %vm2881_vm0, %v2880_v0 }
 0xa2b   : > { %v1931_v43 = vpop.f32.mrf.mxu1 }
 0xa2c   : > { %v1935_v45 = vadd.f32 %v1931_v43, %v1693_v36 }
 0xa2d   : > { %v2528_v46 = vpop.f32.mrf.mxu1 }
 0xa2e   : > { %v1943_v47 = vadd.f32 %v2370_v44, %v1935_v45 }
 0xa30   : > { %v1944_v48 = vadd.f32 %v1943_v47, %v3231_v10  ;;  %v2069_v10 = vld [vmem:[%s3546_s29 + $0x38] sm:$0xff] }
 0xa31   : > { %2541 = vmatpush3.msra.mxu1 %v2069_v10 }
 0xa32   : > { %v1947_v49 = vsel %vm732_vm1, %v1944_v48, 0.0  ;;  %v1952_v50 = vmul.f32 %v1944_v48, %v1944_v48  ;;  %2542 = vmatprep.subr.mxu1 %v2880_v0 }
 0xa33   : > { %1948 = vadd.xlane.f32.xlu1 %v1947_v49  ;;  %2543 = vmatpush3.msra.mxu1 %v2068_v56 }
 0xa34   : > { %v1953_v51 = vsel %vm732_vm1, %v1952_v50, 0.0  ;;  %2544 = vmatprep.subr.mxu1 %v2880_v0 }
 0xa35   : > { %1954 = vadd.xlane.f32.xlu0 %v1953_v51  ;;  %2545 = vmatpush3.msra.mxu1 %v2067_v57 }
 0xa36   : > { %2546 = vmatprep.subr.mxu1 %v2880_v0 }
 0xa37   : > { %2547 = vmatpush3.msra.mxu1 %v2066_v58 }
 0xa38   : > { %2548 = vmatprep.subr.mxu1 %v2880_v0 }
 0xa39   : > { %2549 = vmatpush3.msra.mxu1 %v2065_v59 }
 0xa3a   : > { %2550 = vmatprep.subr.mxu1 %v2880_v0 }
 0xa3b   : > { %2551 = vmatpush3.msra.mxu1 %v2064_v12 }
 0xa3c   : > { %2552 = vmatprep.subr.mxu1 %v2880_v0 }
 0xa3d   : > { %2553 = vmatpush3.msra.mxu1 %v2063_v13 }
 0xa3e   : > { %2554 = vmatprep.subr.mxu1 %v2880_v0 }
 0xa3f   : > { %2555 = vmatpush3.msra.mxu1 %v2062_v14 }
 0xabc   : > { %v1949_v60 = vpop.xlane.xlu1 %1948 }
 0xabd   : > { %v1951_v61 = vmul.f32 0.03125, %v1949_v60 }
 0xabe   : > { %v1955_v62 = vpop.xlane.xlu0 %1954 }
 0xabf   : > { %v1957_v63 = vmul.f32 %v1951_v61, %v1951_v61  ;;  %v1956_v1 = vmul.f32 0.03125, %v1955_v62  ;;  %v1961_v4 = vsub.f32 %v1944_v48, %v1951_v61 }
 0xac1   : > { %v1958_v2 = vsub.f32 %v1956_v1, %v1957_v63 }
 0xac3   : > { %v1959_v3 = vadd.f32 1e-05, %v1958_v2 }
 0xac5   : > { %2659 = vrsqrt.f32 %v1959_v3 }
 0xad2   : > { %v2660_v5 = vpop.eup %2659 }
 0xad3   : > { %v1962_v7 = vmul.f32 %v2660_v5, %v1961_v4 }
 0xad5   : > { %v1969_v9 = vmul.f32 %v2371_v6, %v1962_v7 }
 0xad7   : > { %v1976_v11 = vadd.f32 %v2372_v8, %v1969_v9 }
 0xad9   : > { %2538 = vmatmul.mubr.msk.f32.vlgmr.msra.gmra.mxu0 %vm732_vm1, %v1976_v11 }
 0xb99   : > { %v2057_v16 = vpop.f32.mrf.mxu0 }
 0xb9a   : > { %v2058_v17 = vadd.f32 %v2373_v15, %v2057_v16 }
 0xb9b   : > { %v2539_v18 = vpop.f32.mrf.mxu0 }
 0xb9c   : > { %v2061_v19 = vmax.f32 %v2058_v17, 0.0 }
 0xb9e   : > { %2557 = vmatmul.mubr.msk.f32.vlgmr.msra.gmra.mxu1 %vm2077_vm3, %v2061_v19 }
 0xc5e   : > { %v2147_v21 = vpop.f32.mrf.mxu1 }
 0xc5f   : > { %v2148_v22 = vadd.f32 %v2375_v20, %v2147_v21 }
 0xc60   : > { %v2558_v23 = vpop.f32.mrf.mxu1 }
 0xc61   : > { %v2151_v24 = vadd.f32 %v2148_v22, %v1976_v11 }
 0xc63   : > { %v2154_v0 = vsel %vm732_vm1, %v2151_v24, 0.0  ;;  %v2158_v25 = vmul.f32 %v2151_v24, %v2151_v24 }
 0xc64   : > { %2155 = vadd.xlane.f32.xlu0 %v2154_v0 }
 0xc65   : > { %v2159_v27 = vsel %vm732_vm1, %v2158_v25, 0.0 }
 0xc68   : > { %2160 = vadd.xlane.f32.xlu0 %v2159_v27 }
 0xced   : > { %v2156_v28 = vpop.xlane.xlu0 %2155 }
 0xcee   : > { %v2157_v29 = vmul.f32 0.03125, %v2156_v28 }
 0xcf0   : > { %v2163_v31 = vmul.f32 %v2157_v29, %v2157_v29  ;;  %v2167_v35 = vsub.f32 %v2151_v24, %v2157_v29 }
 0xcf1   : > { %v2161_v30 = vpop.xlane.xlu0 %2160 }
 0xcf2   : > { %v2162_v32 = vmul.f32 0.03125, %v2161_v30 }
 0xcf4   : > { %v2164_v33 = vsub.f32 %v2162_v32, %v2163_v31 }
 0xcf6   : > { %v2165_v34 = vadd.f32 1e-05, %v2164_v33 }
 0xcf8   : > { %2661 = vrsqrt.f32 %v2165_v34 }
 0xd05   : > { %v2662_v36 = vpop.eup %2661 }
 0xd06   : > { %v2168_v38 = vmul.f32 %v2662_v36, %v2167_v35 }
 0xd08   : > { %v2175_v40 = vmul.f32 %v2377_v37, %v2168_v38 }
 0xd0a   : > { %v2182_v41 = vadd.f32 %v2378_v39, %v2175_v40 }
 0xd0c   : > { %2183 = vst.msk [vmem:[%s717_s2] sm:$0xff] %vm732_vm1, %v2182_v41 }
 0xd0d   : > { %2812 = shalt.err (!%p2809_p11)
}
 0xd0e   : > { %s2813_s19 = scalar_lea.hbm %s2196_s28, 128  ;;  %s2817_s27 = scalar_lea.hbm %s3555_s15, 256 }
 0xd0f   : > { %p2814_p13 = scmp.ne.s32.totalorder %s2196_s28, %s2813_s19  ;;  %p2818_p10 = scmp.lt.s32.totalorder %s2196_s28, %s3555_s15 }
 0xd10   : > { %p2819_p9 = scmp.lt.s32.totalorder %s2817_s27, %s2813_s19 }
 0xd11   : > { %p2815_p1 = pnand %p2814_p13, %p3556_p0 }
 0xd12   : > { %p2820_p12 = por %p2819_p9, %p2818_p10 }
 0xd13   : > { %p2816_p6 = pneg %p2815_p1 }
 0xd15   : > { %p2821_p7 = pnand %p2820_p12, %p2816_p6 }
 0xd17   : > { %2824 = shalt.err (!%p2821_p7)
}
 0xd18   : > { %2573 = dma.vmem_to_hbm [thread:$0]  (%p3556_p0), %s2199_s22, 128, %s2196_s28, %s2185_s25  }
 0xd19 PF: > { %s3557_s18 = sld [smem:[#allocation16_spill]] }
 0xd1a   : > { %s3558_s24 = sld [smem:[#allocation19_spill]] }
 0xd1b   : > { %s3559_s2 = sld [smem:[#allocation18_spill]] }
 0xd1f   : > { %s2210_s23 = sand.u32 1, %s3557_s18  }
 0xd20   : > { %p3560_p3 = scmp.ne.s32.totalorder %s3558_s24, 0  ;;  %s2211_s9 = scalar_lea.sflag [#allocation4], %s2210_s23 }
 0xd21   : > { %p3561_p5 = scmp.ge.s32.totalorder %s3559_s2, 2 }
 0xd23   : > { %p2593_p2 = pnand %p3561_p5, %p3560_p3 }
 0xd25   : > { %p2594_p4 = pneg %p2593_p2 }
 0xd27   : > { %2854 = dma.done.wait (%p2594_p4), %s2211_s9, 128  }
 0xd28   : > { %2856 = vsyncadd (%p2594_p4), %s2211_s9, 4294967168  ;;  %s3562_s21 = sld [smem:[#allocation20_spill]]  ;;  %s3565_s0 = smov %s2863_s30 }
 0xd29   : > { %s3563_s26 = sld [smem:[#allocation17_spill]] }
 0xd2a   : > { %s3564_s20 = sld [smem:[#allocation21_spill]] }
 0xd2e   : > { %p36_p8 = scmp.ge.s32.totalorder %s3562_s21, 4  }
 0xd2f   : > { %s3566_s30 = smov %s3563_s26 }
 0xd30   :  { %38 = sbr.rel (!%p36_p8) target bundleno = 23 (0x17), region = 176 }
 0xd35   :  { %2216 = vsyncpa [#allocation3], 1 }
 0xd36   :  { %2218 = vsyncpa [#allocation3 + $0x1], 1 }
 0xd37   :  { %2219 = vsyncpa [#allocation6], 1 }
 0xd38   :  { %2221 = vsyncpa [#allocation6 + $0x1], 1 }
 0xd39   :  { %2222 = vsyncpa [#allocation9], 1 }
 0xd3a   :  { %2223 = vsyncpa [#allocation4], 1 }
 0xd3b   :  { %2225 = vsyncpa [#allocation4 + $0x1], 1 }

</bundles_post_ra>
